<compile_context>
chip_gen: v6e
topology: v6e:2x2x1
jax: 0.10.0
libtpu: 0.0.40
codegen_flags: <defaults>
</compile_context>

<pallas_src>
import jax
import jax.numpy as jnp
import numpy as np
from jax import lax
from jax.experimental import pallas as pl
from jax.experimental.pallas import tpu as pltpu

# fiber[l] = number of channels of degree l (rep dimension m_l = 2l + 1)
FIBER = (8, 4, 2)
MULT = 4
FIBER_HIDDEN = tuple(d * MULT for d in FIBER)   # (32, 16, 8)
SUM_FIBER = sum(FIBER)                          # 14
SUM_HIDDEN = sum(FIBER_HIDDEN)                  # 56
EPS = 1e-12

D0, D1, D2 = FIBER
R1, R2 = 3, 5                                   # rep dims of degrees 1, 2
C1, C2 = D1 * R1, D2 * R2                       # 12, 10 flattened (channel-major) widths
G1, G2 = FIBER_HIDDEN[1], FIBER_HIDDEN[2]       # 16, 8 gate widths
H1, H2 = G1 * R1, G2 * R2                       # 48, 40 hidden widths (channel-major)


def ff_kernel(x0_ref, x1_ref, x2_ref,
              m12_ref, w0_ref, w12i_ref, e12_ref, w0o_ref, w12o_ref,
              y0_ref, y1_ref, y2_ref):
    # Everything is token-major (blk, channels): tokens on sublanes, channels on lanes.
    # Degree >= 1 columns are channel-major (c * m_l + m), i.e. the natural torch flatten.
    f32 = jnp.float32
    x0 = x0_ref[...]                                                   # (blk, 8)
    x1 = x1_ref[...]                                                   # (blk, 12)
    x2 = x2_ref[...]                                                   # (blk, 10)

    # ---- prenorm: RMS over the whole degree-l rep, per token --------------
    # 1 / clamp(rms, eps) == rsqrt(max(sumsq, eps^2 * d)) * sqrt(d)
    ss0 = jnp.sum(x0 * x0, axis=-1, keepdims=True)                     # (blk, 1)
    inv0 = lax.rsqrt(jnp.maximum(ss0, (EPS * EPS) * D0)) * (D0 ** 0.5)

    # degrees 1 & 2: ONE packed reduction matmul on x^2 gives the RMS sums and the
    # scale^2-weighted per-channel sums for the htype norms (x^2 computed only once).
    x12 = jnp.concatenate([x1, x2], axis=-1)                           # (blk, 22)
    r = jnp.dot(x12 * x12, m12_ref[...], preferred_element_type=f32)   # (blk, 8)
    inv1 = lax.rsqrt(jnp.maximum(r[:, 0:1], (EPS * EPS) * D1)) * (D1 ** 0.5)
    inv2 = lax.rsqrt(jnp.maximum(r[:, 1:2], (EPS * EPS) * D2)) * (D2 ** 0.5)
    h1n = jnp.sqrt(jnp.maximum(r[:, 2:2 + D1], 0.0)) * inv1            # (blk, 4)  |scale1_c| * ||n1_c||
    h2n = jnp.sqrt(jnp.maximum(r[:, 2 + D1:2 + D1 + D2], 0.0)) * inv2  # (blk, 2)

    # ---- degree-0 project_in on cat([n0, |n1|, |n2|]): one (14 -> 56) dot ----
    # (scale0 is folded into the first 8 rows of w0; h1n/h2n already carry their scales)
    z0 = jnp.concatenate([x0 * inv0, h1n, h2n], axis=-1)               # (blk, 14)
    h0 = jnp.dot(z0, w0_ref[...], preferred_element_type=f32)          # (blk, 56) = [g1 | g2 | t0]

    # ---- gate --------------------------------------------------------------
    g12 = jax.nn.sigmoid(h0[:, :G1 + G2])                              # (blk, 24)
    t0 = h0[:, G1 + G2:]                                               # (blk, 32)
    a0 = t0 * jax.nn.sigmoid(t0)                                       # SiLU

    # ---- degrees 1 & 2: block-diag project_in + gate expansion on the MXU ----
    lane = lax.broadcasted_iota(jnp.int32, (1, C1 + C2), 1)
    inv12 = jnp.where(lane < C1, inv1, inv2)                           # (blk, 22)
    h12 = jnp.dot(x12 * inv12, w12i_ref[...], preferred_element_type=f32)  # (blk, 88)
    ge = jnp.dot(g12, e12_ref[...], preferred_element_type=f32)             # (blk, 88)
    a12 = h12 * ge

    # ---- project_out -------------------------------------------------------
    y0_ref[...] = jnp.dot(a0, w0o_ref[...], preferred_element_type=f32).astype(y0_ref.dtype)
    y12 = jnp.dot(a12, w12o_ref[...], preferred_element_type=f32)      # (blk, 22)
    y1_ref[...] = y12[:, :C1].astype(y1_ref.dtype)
    y2_ref[...] = y12[:, C1:C1 + C2].astype(y2_ref.dtype)


def init_params(key):
    ks = jax.random.split(key, 6)
    params = {}
    # Norm transforms init to ones (as in the torch module)
    params["scale0"] = jnp.ones((1, FIBER[0]), jnp.float32)
    params["scale1"] = jnp.ones((1, 1, FIBER[1]), jnp.float32)
    params["scale2"] = jnp.ones((1, 1, FIBER[2]), jnp.float32)
    # project_in: degree-0 weight (sum(fiber), sum(fiber_hidden)); degree-l weight (d_l, d_l*mult)
    params["w0_in"] = jax.random.normal(ks[0], (SUM_FIBER, SUM_HIDDEN), jnp.float32) / np.sqrt(SUM_FIBER)
    params["w1_in"] = jax.random.normal(ks[1], (FIBER[1], FIBER_HIDDEN[1]), jnp.float32) / np.sqrt(FIBER[1])
    params["w2_in"] = jax.random.normal(ks[2], (FIBER[2], FIBER_HIDDEN[2]), jnp.float32) / np.sqrt(FIBER[2])
    # project_out: the module default init_out_zero=True would zero these (forward returns 0s);
    # we use deterministic random weights so the full compute path is numerically exercised.
    params["w0_out"] = jax.random.normal(ks[3], (FIBER_HIDDEN[0], FIBER[0]), jnp.float32) / np.sqrt(FIBER_HIDDEN[0])
    params["w1_out"] = jax.random.normal(ks[4], (FIBER_HIDDEN[1], FIBER[1]), jnp.float32) / np.sqrt(FIBER_HIDDEN[1])
    params["w2_out"] = jax.random.normal(ks[5], (FIBER_HIDDEN[2], FIBER[2]), jnp.float32) / np.sqrt(FIBER_HIDDEN[2])
    return params


def _block_diag(a, b):
    za = jnp.zeros((a.shape[0], b.shape[1]), a.dtype)
    zb = jnp.zeros((b.shape[0], a.shape[1]), b.dtype)
    return jnp.concatenate([jnp.concatenate([a, za], axis=1),
                            jnp.concatenate([zb, b], axis=1)], axis=0)


def _prep_weights(params):
    """Tiny per-call weight repack (hoist/cache in a real model): folds the norm scales and
    all rep-component bookkeeping into the weights so data never needs reordering."""
    f32 = jnp.float32
    s0 = params["scale0"].reshape(D0).astype(f32)
    s1 = params["scale1"].reshape(D1).astype(f32)
    s2 = params["scale2"].reshape(D2).astype(f32)
    i3 = jnp.eye(R1, dtype=f32)
    i5 = jnp.eye(R2, dtype=f32)

    # packed reduction matrix (22, 8): columns =
    # [ss1, ss2, scale1^2-weighted per-channel sums (4), scale2^2-weighted per-channel sums (2)]
    sel1 = jnp.kron(jnp.eye(D1, dtype=f32), jnp.ones((R1, 1), f32))    # (12, 4)
    sel2 = jnp.kron(jnp.eye(D2, dtype=f32), jnp.ones((R2, 1), f32))    # (10, 2)
    top = jnp.concatenate([jnp.ones((C1, 1), f32), jnp.zeros((C1, 1), f32),
                           sel1 * (s1 ** 2)[None, :], jnp.zeros((C1, D2), f32)], axis=1)
    bot = jnp.concatenate([jnp.zeros((C2, 1), f32), jnp.ones((C2, 1), f32),
                           jnp.zeros((C2, D1), f32), sel2 * (s2 ** 2)[None, :]], axis=1)
    m12 = jnp.concatenate([top, bot], axis=0)                          # (22, 8)

    # degree-0 project_in with scale0 folded into its first 8 rows
    w0 = jnp.concatenate([params["w0_in"][:D0] * s0[:, None],
                          params["w0_in"][D0:]], axis=0).astype(f32)   # (14, 56)

    # block-diag degree>=1 project_in (channel-major rows & cols), scales folded
    w12i = _block_diag(jnp.kron(params["w1_in"] * s1[:, None], i3),    # (12, 48)
                       jnp.kron(params["w2_in"] * s2[:, None], i5))    # (10, 40) -> (22, 88)

    # 0/1 gate-expansion matrix (rides the MXU instead of materializing gate copies)
    e12 = _block_diag(jnp.kron(jnp.eye(G1, dtype=f32), jnp.ones((1, R1), f32)),
                      jnp.kron(jnp.eye(G2, dtype=f32), jnp.ones((1, R2), f32)))  # (24, 88)

    w0o = params["w0_out"].astype(f32)                                 # (32, 8)
    w12o = _block_diag(jnp.kron(params["w1_out"], i3),                 # (48, 12)
                       jnp.kron(params["w2_out"], i5))                 # (40, 10) -> (88, 22)
    return m12, w0, w12i, e12, w0o, w12o


def feed_forward_pallas(features, params, t_tile=2048):
    x0, x1, x2 = features[0], features[1], features[2]
    B, N, d0, _ = x0.shape
    d1, d2 = x1.shape[2], x2.shape[2]
    T = B * N

    # natural token-major flattens: pure views, no transposes / swapaxes / copies
    x0f = x0.reshape(T, d0)
    x1f = x1.reshape(T, d1 * R1)
    x2f = x2.reshape(T, d2 * R2)

    # token tile: multiple of 128; force >= 2 grid steps whenever T allows it (megacore / v7x)
    t_tile = max(128, (t_tile // 128) * 128)
    t128 = ((T + 127) // 128) * 128
    if t128 >= 256:
        half = ((((T + 1) // 2) + 127) // 128) * 128
        blk = min(t_tile, half)
    else:
        blk = t128
    T_pad = ((T + blk - 1) // blk) * blk
    grid = (T_pad // blk,)
    pad = T_pad - T
    if pad:  # only pays a copy when T is not already a tile multiple
        x0f = jnp.pad(x0f, ((0, pad), (0, 0)))
        x1f = jnp.pad(x1f, ((0, pad), (0, 0)))
        x2f = jnp.pad(x2f, ((0, pad), (0, 0)))

    m12, w0, w12i, e12, w0o, w12o = _prep_weights(params)
    weights = (m12, w0, w12i, e12, w0o, w12o)

    def tok_spec(cols):
        return pl.BlockSpec((blk, cols), lambda i: (i, 0))

    def full_spec(a):
        nd = a.ndim
        return pl.BlockSpec(a.shape, lambda i, nd=nd: (0,) * nd)

    in_specs = ([tok_spec(d0), tok_spec(d1 * R1), tok_spec(d2 * R2)]
                + [full_spec(w) for w in weights])
    out_shape = (jax.ShapeDtypeStruct((T_pad, d0), jnp.float32),
                 jax.ShapeDtypeStruct((T_pad, d1 * R1), jnp.float32),
                 jax.ShapeDtypeStruct((T_pad, d2 * R2), jnp.float32))
    out_specs = (tok_spec(d0), tok_spec(d1 * R1), tok_spec(d2 * R2))

    y0p, y1p, y2p = pl.pallas_call(
        ff_kernel,
        out_shape=out_shape,
        grid_spec=pltpu.PrefetchScalarGridSpec(
            num_scalar_prefetch=0,
            grid=grid,
            in_specs=in_specs,
            out_specs=out_specs),
        compiler_params=pltpu.CompilerParams(
            dimension_semantics=("parallel",)),
    )(x0f, x1f, x2f, *weights)

    # natural reshapes back to the fiber-dict layout (B, N, channels, 2l+1) — no transposes
    y0 = y0p[:T].reshape(B, N, d0, 1)
    y1 = y1p[:T].reshape(B, N, d1, R1)
    y2 = y2p[:T].reshape(B, N, d2, R2)
    return {0: y0, 1: y1, 2: y2}


def feed_forward_ref(features, params):
    """Pure-JAX reference mirroring the PyTorch module."""
    scales = (params["scale0"].reshape(FIBER[0], 1),
              params["scale1"].reshape(FIBER[1], 1),
              params["scale2"].reshape(FIBER[2], 1))
    outs = {}
    for l, d in enumerate(FIBER):
        t = features[l]
        l2 = jnp.linalg.norm(t, axis=-1, keepdims=True)
        rms = jnp.linalg.norm(l2, axis=-2, keepdims=True) * d ** (-0.5)
        outs[l] = t / jnp.maximum(rms, EPS) * scales[l]
    type0 = jnp.concatenate(
        [outs[0]] + [jnp.linalg.norm(outs[l], axis=-1, keepdims=True) for l in (1, 2)],
        axis=-2)
    h0 = jnp.einsum('...dm,de->...em', type0, params["w0_in"])
    h1 = jnp.einsum('...dm,de->...em', outs[1], params["w1_in"])
    h2 = jnp.einsum('...dm,de->...em', outs[2], params["w2_in"])
    e1, e2 = FIBER_HIDDEN[1], FIBER_HIDDEN[2]
    g1, g2, t0 = h0[..., :e1, :], h0[..., e1:e1 + e2, :], h0[..., e1 + e2:, :]
    a0 = jax.nn.silu(t0)
    a1 = h1 * jax.nn.sigmoid(g1)
    a2 = h2 * jax.nn.sigmoid(g2)
    return {
        0: jnp.einsum('...dm,de->...em', a0, params["w0_out"]),
        1: jnp.einsum('...dm,de->...em', a1, params["w1_out"]),
        2: jnp.einsum('...dm,de->...em', a2, params["w2_out"]),
    }


if __name__ == "__main__":
    key = jax.random.PRNGKey(0)
    kx, kp = jax.random.split(key)
    params = init_params(kp)

    # case 1: tiny (single 128-token tile, grid=(1,))
    # case 2: non-multiple-of-128 token count -> padding path + 2-step "parallel" grid
    for (B, N) in ((2, 8), (3, 70)):
        k0, k1, k2 = jax.random.split(jax.random.fold_in(kx, B * N), 3)
        features = {
            0: jax.random.normal(k0, (B, N, FIBER[0], 1), jnp.float32),
            1: jax.random.normal(k1, (B, N, FIBER[1], 3), jnp.float32),
            2: jax.random.normal(k2, (B, N, FIBER[2], 5), jnp.float32),
        }
        out = jax.block_until_ready(feed_forward_pallas(features, params))
        ref = jax.block_until_ready(feed_forward_ref(features, params))
        for l in range(3):
            np.testing.assert_allclose(np.asarray(out[l]), np.asarray(ref[l]),
                                       rtol=2e-2, atol=2e-2)
    print("KERNEL_OK")
</pallas_src>

<mosaic_0001>
module attributes {stable_mosaic.version = 11 : i64} {
  func.func @ff_kernel(%arg0: i32, %arg1: memref<128x8xf32, #tpu.memory_space<vmem>>, %arg2: memref<128x12xf32, #tpu.memory_space<vmem>>, %arg3: memref<128x10xf32, #tpu.memory_space<vmem>>, %arg4: memref<22x8xf32, #tpu.memory_space<vmem>>, %arg5: memref<14x56xf32, #tpu.memory_space<vmem>>, %arg6: memref<22x88xf32, #tpu.memory_space<vmem>>, %arg7: memref<24x88xf32, #tpu.memory_space<vmem>>, %arg8: memref<32x8xf32, #tpu.memory_space<vmem>>, %arg9: memref<88x22xf32, #tpu.memory_space<vmem>>, %arg10: memref<128x8xf32, #tpu.memory_space<vmem>>, %arg11: memref<128x12xf32, #tpu.memory_space<vmem>>, %arg12: memref<128x10xf32, #tpu.memory_space<vmem>>) attributes {dimension_semantics = [#tpu.dimension_semantics<parallel>], iteration_bounds = array<i64: 1>, scalar_prefetch = 0 : i64, scratch_operands = 0 : i64, tpu.core_type = #tpu.core_type<tc>, window_params = [{transform_indices = @transform_0, window_bounds = array<i64: 128, 8>}, {transform_indices = @transform_1, window_bounds = array<i64: 128, 12>}, {transform_indices = @transform_2, window_bounds = array<i64: 128, 10>}, {pipeline_mode = #tpu.pipeline_mode<synchronous>, transform_indices = @transform_3, window_bounds = array<i64: 22, 8>}, {pipeline_mode = #tpu.pipeline_mode<synchronous>, transform_indices = @transform_4, window_bounds = array<i64: 14, 56>}, {pipeline_mode = #tpu.pipeline_mode<synchronous>, transform_indices = @transform_5, window_bounds = array<i64: 22, 88>}, {pipeline_mode = #tpu.pipeline_mode<synchronous>, transform_indices = @transform_6, window_bounds = array<i64: 24, 88>}, {pipeline_mode = #tpu.pipeline_mode<synchronous>, transform_indices = @transform_7, window_bounds = array<i64: 32, 8>}, {pipeline_mode = #tpu.pipeline_mode<synchronous>, transform_indices = @transform_8, window_bounds = array<i64: 88, 22>}, {transform_indices = @transform_9, window_bounds = array<i64: 128, 8>}, {transform_indices = @transform_10, window_bounds = array<i64: 128, 12>}, {transform_indices = @transform_11, window_bounds = array<i64: 128, 10>}]} {
    %c0 = arith.constant 0 : index
    %c0_0 = arith.constant 0 : index
    %0 = vector.load %arg1[%c0, %c0_0] : memref<128x8xf32, #tpu.memory_space<vmem>>, vector<128x8xf32>
    %c0_1 = arith.constant 0 : index
    %c0_2 = arith.constant 0 : index
    %1 = vector.load %arg2[%c0_1, %c0_2] : memref<128x12xf32, #tpu.memory_space<vmem>>, vector<128x12xf32>
    %c0_3 = arith.constant 0 : index
    %c0_4 = arith.constant 0 : index
    %2 = vector.load %arg3[%c0_3, %c0_4] : memref<128x10xf32, #tpu.memory_space<vmem>>, vector<128x10xf32>
    %3 = arith.mulf %0, %0 : vector<128x8xf32>
    %cst = arith.constant dense<0.000000e+00> : vector<128xf32>
    %4 = vector.multi_reduction <add>, %3, %cst [1] : vector<128x8xf32> to vector<128xf32>
    %5 = vector.shape_cast %4 : vector<128xf32> to vector<128x1xf32>
    %cst_5 = arith.constant 8.000000e-24 : f32
    %6 = vector.broadcast %cst_5 : f32 to vector<128x1xf32>
    %7 = arith.maximumf %5, %6 : vector<128x1xf32>
    %8 = math.rsqrt %7 : vector<128x1xf32>
    %cst_6 = arith.constant 2.82842708 : f32
    %9 = vector.broadcast %cst_6 : f32 to vector<128x1xf32>
    %10 = arith.mulf %8, %9 : vector<128x1xf32>
    %11 = tpu.concatenate %1, %2 in 1 : vector<128x12xf32>, vector<128x10xf32> -> vector<128x22xf32>
    %12 = arith.mulf %11, %11 : vector<128x22xf32>
    %c0_7 = arith.constant 0 : index
    %c0_8 = arith.constant 0 : index
    %13 = vector.load %arg4[%c0_7, %c0_8] : memref<22x8xf32, #tpu.memory_space<vmem>>, vector<22x8xf32>
    %cst_9 = arith.constant dense<0.000000e+00> : vector<128x8xf32>
    %14 = tpu.matmul %12, %13, %cst_9 {dimension_numbers = #tpu.dot_dimension_numbers<[1], [0], [0], [1], [0, 0, 1, 1], [], []>} : vector<128x22xf32>, vector<22x8xf32>, vector<128x8xf32> -> vector<128x8xf32>
    %15 = vector.extract_strided_slice %14 {offsets = [0, 0], sizes = [128, 1], strides = [1, 1]} : vector<128x8xf32> to vector<128x1xf32>
    %cst_10 = arith.constant 4.000000e-24 : f32
    %16 = vector.broadcast %cst_10 : f32 to vector<128x1xf32>
    %17 = arith.maximumf %15, %16 : vector<128x1xf32>
    %18 = math.rsqrt %17 : vector<128x1xf32>
    %cst_11 = arith.constant 2.000000e+00 : f32
    %19 = vector.broadcast %cst_11 : f32 to vector<128x1xf32>
    %20 = arith.mulf %18, %19 : vector<128x1xf32>
    %21 = vector.extract_strided_slice %14 {offsets = [0, 1], sizes = [128, 1], strides = [1, 1]} : vector<128x8xf32> to vector<128x1xf32>
    %cst_12 = arith.constant 2.000000e-24 : f32
    %22 = vector.broadcast %cst_12 : f32 to vector<128x1xf32>
    %23 = arith.maximumf %21, %22 : vector<128x1xf32>
    %24 = math.rsqrt %23 : vector<128x1xf32>
    %cst_13 = arith.constant 1.41421354 : f32
    %25 = vector.broadcast %cst_13 : f32 to vector<128x1xf32>
    %26 = arith.mulf %24, %25 : vector<128x1xf32>
    %27 = vector.extract_strided_slice %14 {offsets = [0, 2], sizes = [128, 4], strides = [1, 1]} : vector<128x8xf32> to vector<128x4xf32>
    %cst_14 = arith.constant 0.000000e+00 : f32
    %28 = vector.broadcast %cst_14 : f32 to vector<128x4xf32>
    %29 = arith.maximumf %27, %28 : vector<128x4xf32>
    %30 = math.sqrt %29 : vector<128x4xf32>
    %31 = vector.broadcast %20 : vector<128x1xf32> to vector<128x4xf32>
    %32 = arith.mulf %30, %31 : vector<128x4xf32>
    %33 = vector.extract_strided_slice %14 {offsets = [0, 6], sizes = [128, 2], strides = [1, 1]} : vector<128x8xf32> to vector<128x2xf32>
    %cst_15 = arith.constant 0.000000e+00 : f32
    %34 = vector.broadcast %cst_15 : f32 to vector<128x2xf32>
    %35 = arith.maximumf %33, %34 : vector<128x2xf32>
    %36 = math.sqrt %35 : vector<128x2xf32>
    %37 = vector.broadcast %26 : vector<128x1xf32> to vector<128x2xf32>
    %38 = arith.mulf %36, %37 : vector<128x2xf32>
    %39 = vector.broadcast %10 : vector<128x1xf32> to vector<128x8xf32>
    %40 = arith.mulf %0, %39 : vector<128x8xf32>
    %41 = tpu.concatenate %40, %32, %38 in 1 : vector<128x8xf32>, vector<128x4xf32>, vector<128x2xf32> -> vector<128x14xf32>
    %c0_16 = arith.constant 0 : index
    %c0_17 = arith.constant 0 : index
    %42 = vector.load %arg5[%c0_16, %c0_17] : memref<14x56xf32, #tpu.memory_space<vmem>>, vector<14x56xf32>
    %cst_18 = arith.constant dense<0.000000e+00> : vector<128x56xf32>
    %43 = tpu.matmul %41, %42, %cst_18 {dimension_numbers = #tpu.dot_dimension_numbers<[1], [0], [0], [1], [0, 0, 1, 1], [], []>} : vector<128x14xf32>, vector<14x56xf32>, vector<128x56xf32> -> vector<128x56xf32>
    %44 = vector.extract_strided_slice %43 {offsets = [0, 0], sizes = [128, 24], strides = [1, 1]} : vector<128x56xf32> to vector<128x24xf32>
    %45 = arith.negf %44 : vector<128x24xf32>
    %46 = math.exp %45 : vector<128x24xf32>
    %cst_19 = arith.constant 1.000000e+00 : f32
    %47 = vector.broadcast %cst_19 : f32 to vector<128x24xf32>
    %48 = arith.addf %47, %46 : vector<128x24xf32>
    %49 = arith.divf %47, %48 : vector<128x24xf32>
    %50 = vector.extract_strided_slice %43 {offsets = [0, 24], sizes = [128, 32], strides = [1, 1]} : vector<128x56xf32> to vector<128x32xf32>
    %51 = arith.negf %50 : vector<128x32xf32>
    %52 = math.exp %51 : vector<128x32xf32>
    %cst_20 = arith.constant 1.000000e+00 : f32
    %53 = vector.broadcast %cst_20 : f32 to vector<128x32xf32>
    %54 = arith.addf %53, %52 : vector<128x32xf32>
    %55 = arith.divf %53, %54 : vector<128x32xf32>
    %56 = arith.mulf %50, %55 : vector<128x32xf32>
    %57 = tpu.iota {dimensions = array<i32: 1>} : vector<1x22xi32>
    %c12_i32 = arith.constant 12 : i32
    %58 = vector.broadcast %c12_i32 : i32 to vector<1x22xi32>
    %59 = arith.cmpi slt, %57, %58 : vector<1x22xi32>
    %60 = vector.shape_cast %59 : vector<1x22xi1> to vector<1x22xi1>
    %61 = vector.broadcast %60 : vector<1x22xi1> to vector<128x22xi1>
    %62 = vector.shape_cast %20 : vector<128x1xf32> to vector<128x1xf32>
    %63 = vector.broadcast %62 : vector<128x1xf32> to vector<128x22xf32>
    %64 = vector.shape_cast %26 : vector<128x1xf32> to vector<128x1xf32>
    %65 = vector.broadcast %64 : vector<128x1xf32> to vector<128x22xf32>
    %66 = arith.select %61, %63, %65 : vector<128x22xi1>, vector<128x22xf32>
    %67 = arith.mulf %11, %66 : vector<128x22xf32>
    %c0_21 = arith.constant 0 : index
    %c0_22 = arith.constant 0 : index
    %68 = vector.load %arg6[%c0_21, %c0_22] : memref<22x88xf32, #tpu.memory_space<vmem>>, vector<22x88xf32>
    %cst_23 = arith.constant dense<0.000000e+00> : vector<128x88xf32>
    %69 = tpu.matmul %67, %68, %cst_23 {dimension_numbers = #tpu.dot_dimension_numbers<[1], [0], [0], [1], [0, 0, 1, 1], [], []>} : vector<128x22xf32>, vector<22x88xf32>, vector<128x88xf32> -> vector<128x88xf32>
    %c0_24 = arith.constant 0 : index
    %c0_25 = arith.constant 0 : index
    %70 = vector.load %arg7[%c0_24, %c0_25] : memref<24x88xf32, #tpu.memory_space<vmem>>, vector<24x88xf32>
    %cst_26 = arith.constant dense<0.000000e+00> : vector<128x88xf32>
    %71 = tpu.matmul %49, %70, %cst_26 {dimension_numbers = #tpu.dot_dimension_numbers<[1], [0], [0], [1], [0, 0, 1, 1], [], []>} : vector<128x24xf32>, vector<24x88xf32>, vector<128x88xf32> -> vector<128x88xf32>
    %72 = arith.mulf %69, %71 : vector<128x88xf32>
    %c0_27 = arith.constant 0 : index
    %c0_28 = arith.constant 0 : index
    %73 = vector.load %arg8[%c0_27, %c0_28] : memref<32x8xf32, #tpu.memory_space<vmem>>, vector<32x8xf32>
    %cst_29 = arith.constant dense<0.000000e+00> : vector<128x8xf32>
    %74 = tpu.matmul %56, %73, %cst_29 {dimension_numbers = #tpu.dot_dimension_numbers<[1], [0], [0], [1], [0, 0, 1, 1], [], []>} : vector<128x32xf32>, vector<32x8xf32>, vector<128x8xf32> -> vector<128x8xf32>
    %c0_30 = arith.constant 0 : index
    %c0_31 = arith.constant 0 : index
    %75 = vector.load %arg10[%c0_30, %c0_31] : memref<128x8xf32, #tpu.memory_space<vmem>>, vector<128x8xf32>
    tpu.vector_store %arg10[%c0_30, %c0_31], %74 {strides = array<i32>} : memref<128x8xf32, #tpu.memory_space<vmem>>, vector<128x8xf32>,
    %c0_32 = arith.constant 0 : index
    %c0_33 = arith.constant 0 : index
    %76 = vector.load %arg9[%c0_32, %c0_33] : memref<88x22xf32, #tpu.memory_space<vmem>>, vector<88x22xf32>
    %cst_34 = arith.constant dense<0.000000e+00> : vector<128x22xf32>
    %77 = tpu.matmul %72, %76, %cst_34 {dimension_numbers = #tpu.dot_dimension_numbers<[1], [0], [0], [1], [0, 0, 1, 1], [], []>} : vector<128x88xf32>, vector<88x22xf32>, vector<128x22xf32> -> vector<128x22xf32>
    %78 = vector.extract_strided_slice %77 {offsets = [0, 0], sizes = [128, 12], strides = [1, 1]} : vector<128x22xf32> to vector<128x12xf32>
    %c0_35 = arith.constant 0 : index
    %c0_36 = arith.constant 0 : index
    %79 = vector.load %arg11[%c0_35, %c0_36] : memref<128x12xf32, #tpu.memory_space<vmem>>, vector<128x12xf32>
    tpu.vector_store %arg11[%c0_35, %c0_36], %78 {strides = array<i32>} : memref<128x12xf32, #tpu.memory_space<vmem>>, vector<128x12xf32>,
    %80 = vector.extract_strided_slice %77 {offsets = [0, 12], sizes = [128, 10], strides = [1, 1]} : vector<128x22xf32> to vector<128x10xf32>
    %c0_37 = arith.constant 0 : index
    %c0_38 = arith.constant 0 : index
    %81 = vector.load %arg12[%c0_37, %c0_38] : memref<128x10xf32, #tpu.memory_space<vmem>>, vector<128x10xf32>
    tpu.vector_store %arg12[%c0_37, %c0_38], %80 {strides = array<i32>} : memref<128x10xf32, #tpu.memory_space<vmem>>, vector<128x10xf32>,
    return
  }
  func.func @transform_0(%arg0: i32) -> (i32, i32) {
    %c0_i32 = arith.constant 0 : i32
    %c0_i32_0 = arith.constant 0 : i32
    return %arg0, %c0_i32 : i32, i32
  }
  func.func @transform_1(%arg0: i32) -> (i32, i32) {
    %c0_i32 = arith.constant 0 : i32
    %c0_i32_0 = arith.constant 0 : i32
    return %arg0, %c0_i32 : i32, i32
  }
  func.func @transform_2(%arg0: i32) -> (i32, i32) {
    %c0_i32 = arith.constant 0 : i32
    %c0_i32_0 = arith.constant 0 : i32
    return %arg0, %c0_i32 : i32, i32
  }
  func.func @transform_3(%arg0: i32) -> (i32, i32) {
    %c0_i32 = arith.constant 0 : i32
    %c0_i32_0 = arith.constant 0 : i32
    %c0_i32_1 = arith.constant 0 : i32
    return %c0_i32, %c0_i32_0 : i32, i32
  }
  func.func @transform_4(%arg0: i32) -> (i32, i32) {
    %c0_i32 = arith.constant 0 : i32
    %c0_i32_0 = arith.constant 0 : i32
    %c0_i32_1 = arith.constant 0 : i32
    return %c0_i32, %c0_i32_0 : i32, i32
  }
  func.func @transform_5(%arg0: i32) -> (i32, i32) {
    %c0_i32 = arith.constant 0 : i32
    %c0_i32_0 = arith.constant 0 : i32
    %c0_i32_1 = arith.constant 0 : i32
    return %c0_i32, %c0_i32_0 : i32, i32
  }
  func.func @transform_6(%arg0: i32) -> (i32, i32) {
    %c0_i32 = arith.constant 0 : i32
    %c0_i32_0 = arith.constant 0 : i32
    %c0_i32_1 = arith.constant 0 : i32
    return %c0_i32, %c0_i32_0 : i32, i32
  }
  func.func @transform_7(%arg0: i32) -> (i32, i32) {
    %c0_i32 = arith.constant 0 : i32
    %c0_i32_0 = arith.constant 0 : i32
    %c0_i32_1 = arith.constant 0 : i32
    return %c0_i32, %c0_i32_0 : i32, i32
  }
  func.func @transform_8(%arg0: i32) -> (i32, i32) {
    %c0_i32 = arith.constant 0 : i32
    %c0_i32_0 = arith.constant 0 : i32
    %c0_i32_1 = arith.constant 0 : i32
    return %c0_i32, %c0_i32_0 : i32, i32
  }
  func.func @transform_9(%arg0: i32) -> (i32, i32) {
    %c0_i32 = arith.constant 0 : i32
    %c0_i32_0 = arith.constant 0 : i32
    return %arg0, %c0_i32 : i32, i32
  }
  func.func @transform_10(%arg0: i32) -> (i32, i32) {
    %c0_i32 = arith.constant 0 : i32
    %c0_i32_0 = arith.constant 0 : i32
    return %arg0, %c0_i32 : i32, i32
  }
  func.func @transform_11(%arg0: i32) -> (i32, i32) {
    %c0_i32 = arith.constant 0 : i32
    %c0_i32_0 = arith.constant 0 : i32
    return %arg0, %c0_i32 : i32, i32
  }
}

</mosaic_0001>

<bundles_post_ra>
// kernel: tpu_custom_call.1
= control target key start
LH: loop header
LB: loop body
LE: loop exit
PB: predicated region body
PF: predicated region fallthrough
CT: control target
= control target key end

     0   :  { %s3078_s21 = smov 12   ;;  %vm345_vm0 = vcmask 1045504   ;;  %vm99_vm1 = vcmask 64512   ;;  %vm260_vm2 = vcmask 97280   ;;  %vm296_vm3 = vcmask 179200   ;;  %s3081_s23 = smov 6   ;;  %s4306_s2 = inlined_call_operand.vmem [shape: f32[128,10], index: 2, kind: input, shape index: {}]   ;;  %s4307_s3 = inlined_call_operand.vmem [shape: f32[22,8], index: 3, kind: input, shape index: {}]   ;;  %s4308_s0 = inlined_call_operand.vmem [shape: f32[128,8], index: 0, kind: input, shape index: {}]   ;;  %s4309_s1 = inlined_call_operand.vmem [shape: f32[128,12], index: 1, kind: input, shape index: {}]   ;;  %s4310_s4 = inlined_call_operand.vmem [shape: f32[14,56], index: 4, kind: input, shape index: {}]   ;;  %s4311_s5 = inlined_call_operand.vmem [shape: f32[22,88], index: 5, kind: input, shape index: {}]   ;;  %s4312_s6 = inlined_call_operand.vmem [shape: f32[24,88], index: 6, kind: input, shape index: {}]   ;;  %s4313_s7 = inlined_call_operand.vmem [shape: f32[32,8], index: 7, kind: input, shape index: {}]   ;;  %s4314_s8 = inlined_call_operand.vmem [shape: f32[88,22], index: 8, kind: input, shape index: {}]   ;;  %s4315_s9 = inlined_call_operand.vmem [shape: f32[128,8], index: 9, kind: output, shape index: {0}]   ;;  %s4316_s10 = inlined_call_operand.vmem [shape: f32[128,12], index: 10, kind: output, shape index: {1}]   ;;  %s4317_s11 = inlined_call_operand.vmem [shape: f32[128,10], index: 11, kind: output, shape index: {2}]  }
   0x1   :  { %v67_v0 = vld [vmem:[%s4306_s2] sm:$0xff]  ;;  %v69_v1 = vld [vmem:[%s4306_s2 + $0x10] sm:$0xff]  ;;  %v68_v2 = vld [vmem:[%s4306_s2 + $0x8] sm:$0xff]  ;;  %s3083_s20 = smov 116  }
   0x2   :  { %212 = vrot.lane.b32.xlu0 %v67_v0, %s3078_s21  ;;  %216 = vrot.lane.b32.xlu1 %v69_v1, %s3078_s21  ;;  %v70_v3 = vld [vmem:[%s4306_s2 + $0x18] sm:$0xff]  ;;  %v71_v4 = vld [vmem:[%s4306_s2 + $0x20] sm:$0xff] }
   0x3   :  { %v72_v5 = vld [vmem:[%s4306_s2 + $0x28] sm:$0xff]  ;;  %v295_v6 = vld [vmem:[%s4307_s3 + $0x10] sm:$0x3f]  ;;  %v293_v8 = vld [vmem:[%s4307_s3] sm:$0xff] }
   0x4   :  { %2643 = vmatprep.subr.msk.mxu0 %vm345_vm0, %v295_v6  ;;  %v294_v7 = vld [vmem:[%s4307_s3 + $0x8] sm:$0xff]  ;;  %v73_v9 = vld [vmem:[%s4306_s2 + $0x30] sm:$0xff]  ;;  %v74_v10 = vld [vmem:[%s4306_s2 + $0x38] sm:$0xff] }
   0x5   :  { %2644 = vmatpush3.msk.msra.mxu0 %vm345_vm0, %v295_v6  ;;  %v75_v11 = vld [vmem:[%s4306_s2 + $0x40] sm:$0xff]  ;;  %v76_v12 = vld [vmem:[%s4306_s2 + $0x48] sm:$0xff]  ;;  %v77_v13 = vld [vmem:[%s4306_s2 + $0x50] sm:$0xff] }
   0x6   :  { %214 = vrot.lane.b32.xlu0 %v68_v2, %s3078_s21  ;;  %218 = vrot.lane.b32.xlu1 %v70_v3, %s3078_s21  ;;  %v78_v14 = vld [vmem:[%s4306_s2 + $0x58] sm:$0xff]  ;;  %v79_v15 = vld [vmem:[%s4306_s2 + $0x60] sm:$0xff] }
   0x7   :  { %2645 = vmatprep.subr.mxu0 %v294_v7  ;;  %v80_v16 = vld [vmem:[%s4306_s2 + $0x68] sm:$0xff]  ;;  %v81_v17 = vld [vmem:[%s4306_s2 + $0x70] sm:$0xff]  ;;  %v82_v18 = vld [vmem:[%s4306_s2 + $0x78] sm:$0xff] }
   0x8   :  { %2646 = vmatpush3.msra.mxu0 %v294_v7  ;;  %v35_v19 = vld [vmem:[%s4308_s0] sm:$0xff]  ;;  %v37_v21 = vld [vmem:[%s4308_s0 + $0x10] sm:$0xff]  ;;  %v36_v22 = vld [vmem:[%s4308_s0 + $0x8] sm:$0xff] }
   0x9   :  { %2647 = vmatprep.subr.mxu0 %v293_v8  ;;  %v83_v20 = vmul.f32 %v35_v19, %v35_v19  ;;  %v85_v24 = vmul.f32 %v37_v21, %v37_v21  ;;  %v84_v25 = vmul.f32 %v36_v22, %v36_v22  ;;  %v38_v26 = vld [vmem:[%s4308_s0 + $0x18] sm:$0xff]  ;;  %v39_v27 = vld [vmem:[%s4308_s0 + $0x20] sm:$0xff]  ;;  %v40_v32 = vld [vmem:[%s4308_s0 + $0x28] sm:$0xff] }
   0xa   :  { %220 = vrot.lane.b32.xlu0 %v71_v4, %s3078_s21  ;;  %222 = vrot.lane.b32.xlu1 %v72_v5, %s3078_s21  ;;  %v86_v29 = vmul.f32 %v38_v26, %v38_v26  ;;  %v87_v31 = vmul.f32 %v39_v27, %v39_v27  ;;  %v41_v33 = vld [vmem:[%s4308_s0 + $0x30] sm:$0xff]  ;;  %v88_v35 = vmul.f32 %v40_v32, %v40_v32  ;;  %v42_v38 = vld [vmem:[%s4308_s0 + $0x38] sm:$0xff] }
   0xb   :  { %2648 = vmatpush3.msra.mxu0 %v293_v8  ;;  %v100_v23 = vsel %vm99_vm1, %v83_v20, 0.0  ;;  %v106_v28 = vsel %vm99_vm1, %v85_v24, 0.0  ;;  %v103_v30 = vsel %vm99_vm1, %v84_v25, 0.0  ;;  %v89_v37 = vmul.f32 %v41_v33, %v41_v33  ;;  %v43_v39 = vld [vmem:[%s4308_s0 + $0x40] sm:$0xff]  ;;  %v44_v44 = vld [vmem:[%s4308_s0 + $0x48] sm:$0xff]  ;;  %v45_v45 = vld [vmem:[%s4308_s0 + $0x50] sm:$0xff] }
   0xc   :  { %v109_v34 = vsel %vm99_vm1, %v86_v29, 0.0  ;;  %v112_v36 = vsel %vm99_vm1, %v87_v31, 0.0  ;;  %v115_v40 = vsel %vm99_vm1, %v88_v35, 0.0  ;;  %v90_v41 = vmul.f32 %v42_v38, %v42_v38  ;;  %v46_v50 = vld [vmem:[%s4308_s0 + $0x58] sm:$0xff]  ;;  %v47_v51 = vld [vmem:[%s4308_s0 + $0x60] sm:$0xff]  ;;  %v48_v56 = vld [vmem:[%s4308_s0 + $0x68] sm:$0xff] }
   0xd   :  { %v118_v42 = vsel %vm99_vm1, %v89_v37, 0.0  ;;  %v91_v43 = vmul.f32 %v43_v39, %v43_v39  ;;  %v92_v47 = vmul.f32 %v44_v44, %v44_v44  ;;  %v93_v49 = vmul.f32 %v45_v45, %v45_v45  ;;  %v51_v61 = vld [vmem:[%s4309_s1] sm:$0xff]  ;;  %v53_v62 = vld [vmem:[%s4309_s1 + $0x10] sm:$0xff]  ;;  %v52_v3 = vld [vmem:[%s4309_s1 + $0x8] sm:$0xff] }
   0xe   :  { %224 = vrot.lane.b32.xlu0 %v73_v9, %s3078_s21  ;;  %226 = vrot.lane.b32.xlu1 %v74_v10, %s3078_s21  ;;  %v121_v46 = vsel %vm99_vm1, %v90_v41, 0.0  ;;  %v94_v53 = vmul.f32 %v46_v50, %v46_v50  ;;  %v95_v55 = vmul.f32 %v47_v51, %v47_v51  ;;  %v96_v58 = vmul.f32 %v48_v56, %v48_v56  ;;  %v54_v5 = vld [vmem:[%s4309_s1 + $0x18] sm:$0xff]  ;;  %v57_v20 = vld [vmem:[%s4309_s1 + $0x30] sm:$0xff] }
   0xf   :  { %v124_v48 = vsel %vm99_vm1, %v91_v43, 0.0  ;;  %v127_v52 = vsel %vm99_vm1, %v92_v47, 0.0  ;;  %v130_v54 = vsel %vm99_vm1, %v93_v49, 0.0  ;;  %v58_v21 = vld [vmem:[%s4309_s1 + $0x38] sm:$0xff]  ;;  %v60_v29 = vld [vmem:[%s4309_s1 + $0x48] sm:$0xff]  ;;  %v63_v44 = vld [vmem:[%s4309_s1 + $0x60] sm:$0xff] }
  0x10   :  { %v133_v57 = vsel %vm99_vm1, %v94_v53, 0.0  ;;  %v136_v59 = vsel %vm99_vm1, %v95_v55, 0.0  ;;  %v139_v60 = vsel %vm99_vm1, %v96_v58, 0.0  ;;  %v62_v37 = vld [vmem:[%s4309_s1 + $0x58] sm:$0xff]  ;;  %v64_v45 = vld [vmem:[%s4309_s1 + $0x68] sm:$0xff] }
  0x11   :  { %v66_v53 = vld [vmem:[%s4309_s1 + $0x78] sm:$0xff] }
  0x12   :  { %228 = vrot.lane.b32.xlu0 %v75_v11, %s3078_s21  ;;  %230 = vrot.lane.b32.xlu1 %v76_v12, %s3078_s21  ;;  %v55_v12 = vld [vmem:[%s4309_s1 + $0x20] sm:$0xff] }
  0x16   :  { %232 = vrot.lane.b32.xlu0 %v77_v13, %s3078_s21  ;;  %234 = vrot.lane.b32.xlu1 %v78_v14, %s3078_s21  ;;  %v56_v13 = vld [vmem:[%s4309_s1 + $0x28] sm:$0xff] }
  0x1a   :  { %236 = vrot.lane.b32.xlu0 %v79_v15, %s3078_s21  ;;  %238 = vrot.lane.b32.xlu1 %v80_v16, %s3078_s21 }
  0x1e   :  { %240 = vrot.lane.b32.xlu0 %v81_v17, %s3078_s21  ;;  %242 = vrot.lane.b32.xlu1 %v82_v18, %s3078_s21 }
  0x3d   :  { %101 = vadd.xlane.f32.xlu0 %v100_v23 }
  0x41   :  { %107 = vadd.xlane.f32.xlu0 %v106_v28  ;;  %v59_v28 = vld [vmem:[%s4309_s1 + $0x40] sm:$0xff] }
  0x42   :  { %104 = vadd.xlane.f32.xlu1 %v103_v30 }
  0x45   :  { %110 = vadd.xlane.f32.xlu0 %v109_v34 }
  0x46   :  { %113 = vadd.xlane.f32.xlu1 %v112_v36  ;;  %v61_v36 = vld [vmem:[%s4309_s1 + $0x50] sm:$0xff] }
  0x49   :  { %116 = vadd.xlane.f32.xlu0 %v115_v40 }
  0x4a   :  { %119 = vadd.xlane.f32.xlu1 %v118_v42 }
  0x4d   :  { %122 = vadd.xlane.f32.xlu0 %v121_v46 }
  0x4e   :  { %125 = vadd.xlane.f32.xlu1 %v124_v48 }
  0x51   :  { %128 = vadd.xlane.f32.xlu0 %v127_v52  ;;  %v65_v52 = vld [vmem:[%s4309_s1 + $0x70] sm:$0xff] }
  0x52   :  { %131 = vadd.xlane.f32.xlu1 %v130_v54 }
  0x55   :  { %134 = vadd.xlane.f32.xlu0 %v133_v57 }
  0x56   :  { %137 = vadd.xlane.f32.xlu1 %v136_v59 }
  0x59   :  { %140 = vadd.xlane.f32.xlu0 %v139_v60 }
  0x74   :  { %v213_v63 = vpop.permute.xlu0 %212  ;;  %v217_v0 = vpop.permute.xlu1 %216 }
  0x75   :  { %v3282_v1 = vsel %vm260_vm2, %v51_v61, %v213_v63  ;;  %v3285_v2 = vsel %vm260_vm2, %v53_v62, %v217_v0  ;;  %v49_v61 = vld [vmem:[%s4308_s0 + $0x70] sm:$0xff]  ;;  %v3079_v0 = vmov 1  }
  0x76   :  { %v277_v4 = vmul.f32 %v3282_v1, %v3282_v1  ;;  %v279_v8 = vmul.f32 %v3285_v2, %v3285_v2  ;;  %v97_v62 = vmul.f32 %v49_v61, %v49_v61  ;;  %2846 = vset.pattern.permute.xlu0 %v3079_v0 }
  0x78   :  { %v215_v6 = vpop.permute.xlu0 %214  ;;  %2649 = vmatprep.mubr.msk.f32.mxu0 %vm296_vm3, %v277_v4  ;;  %v219_v7 = vpop.permute.xlu1 %218  ;;  %v142_v63 = vsel %vm99_vm1, %v97_v62, 0.0 }
  0x79   :  { %v3299_v9 = vsel %vm260_vm2, %v52_v3, %v215_v6  ;;  %v3302_v10 = vsel %vm260_vm2, %v54_v5, %v219_v7  ;;  %143 = vadd.xlane.f32.xlu1 %v142_v63  ;;  %v3080_v3 = vmov 0  }
  0x7a   :  { %v278_v11 = vmul.f32 %v3299_v9, %v3299_v9  ;;  %v280_v14 = vmul.f32 %v3302_v10, %v3302_v10  ;;  %2845 = vset.pattern.permute.xlu1 %v3080_v3 }
  0x7c   :  { %2650 = vmatmul.mubr.msk.f32.vlgmr.msra.gmra.mxu0 %vm296_vm3, %v278_v11  ;;  %v221_v15 = vpop.permute.xlu0 %220  ;;  %v223_v16 = vpop.permute.xlu1 %222 }
  0x7d   :  { %v3316_v17 = vsel %vm260_vm2, %v55_v12, %v221_v15  ;;  %2652 = vmatprep.mubr.msk.f32.mxu0 %vm296_vm3, %v279_v8  ;;  %v3320_v18 = vsel %vm260_vm2, %v56_v13, %v223_v16 }
  0x7e   :  { %v281_v19 = vmul.f32 %v3316_v17, %v3316_v17  ;;  %v282_v22 = vmul.f32 %v3320_v18, %v3320_v18 }
  0x80   :  { %2653 = vmatmul.mubr.msk.f32.gmra.mxu0 %vm296_vm3, %v280_v14  ;;  %v225_v23 = vpop.permute.xlu0 %224  ;;  %v227_v24 = vpop.permute.xlu1 %226 }
  0x81   :  { %2655 = vmatprep.mubr.msk.f32.mxu0 %vm296_vm3, %v281_v19  ;;  %v3335_v25 = vsel %vm260_vm2, %v57_v20, %v225_v23  ;;  %v3338_v26 = vsel %vm260_vm2, %v58_v21, %v227_v24 }
  0x82   :  { %v283_v27 = vmul.f32 %v3335_v25, %v3335_v25  ;;  %v284_v30 = vmul.f32 %v3338_v26, %v3338_v26 }
  0x84   :  { %2656 = vmatmul.mubr.msk.f32.gmra.mxu0 %vm296_vm3, %v282_v22  ;;  %v229_v31 = vpop.permute.xlu0 %228  ;;  %v231_v32 = vpop.permute.xlu1 %230 }
  0x85   :  { %2658 = vmatprep.mubr.msk.f32.mxu0 %vm296_vm3, %v283_v27  ;;  %v3353_v33 = vsel %vm260_vm2, %v59_v28, %v229_v31  ;;  %v3356_v34 = vsel %vm260_vm2, %v60_v29, %v231_v32 }
  0x86   :  { %v285_v35 = vmul.f32 %v3353_v33, %v3353_v33  ;;  %v286_v38 = vmul.f32 %v3356_v34, %v3356_v34 }
  0x88   :  { %2659 = vmatmul.mubr.msk.f32.gmra.mxu0 %vm296_vm3, %v284_v30  ;;  %v233_v39 = vpop.permute.xlu0 %232  ;;  %v235_v40 = vpop.permute.xlu1 %234 }
  0x89   :  { %2661 = vmatprep.mubr.msk.f32.mxu0 %vm296_vm3, %v285_v35  ;;  %v3371_v41 = vsel %vm260_vm2, %v61_v36, %v233_v39  ;;  %v3374_v42 = vsel %vm260_vm2, %v62_v37, %v235_v40 }
  0x8a   :  { %v287_v43 = vmul.f32 %v3371_v41, %v3371_v41  ;;  %v288_v46 = vmul.f32 %v3374_v42, %v3374_v42 }
  0x8c   :  { %2662 = vmatmul.mubr.msk.f32.gmra.mxu0 %vm296_vm3, %v286_v38  ;;  %v237_v47 = vpop.permute.xlu0 %236  ;;  %v239_v48 = vpop.permute.xlu1 %238 }
  0x8d   :  { %2664 = vmatprep.mubr.msk.f32.mxu0 %vm296_vm3, %v287_v43  ;;  %v3389_v49 = vsel %vm260_vm2, %v63_v44, %v237_v47  ;;  %v3392_v50 = vsel %vm260_vm2, %v64_v45, %v239_v48 }
  0x8e   :  { %4322 = vst [vmem:[#allocation2_spill] sm:$0xff] %v3389_v49  ;;  %4323 = vst [vmem:[#allocation3_spill] sm:$0xff] %v3392_v50  ;;  %v289_v51 = vmul.f32 %v3389_v49, %v3389_v49  ;;  %v290_v54 = vmul.f32 %v3392_v50, %v3392_v50 }
  0x90   :  { %2665 = vmatmul.mubr.msk.f32.gmra.mxu0 %vm296_vm3, %v288_v46  ;;  %v241_v55 = vpop.permute.xlu0 %240  ;;  %v243_v56 = vpop.permute.xlu1 %242 }
  0x91   :  { %2667 = vmatprep.mubr.msk.f32.mxu0 %vm296_vm3, %v289_v51  ;;  %v3407_v57 = vsel %vm260_vm2, %v65_v52, %v241_v55  ;;  %v3410_v58 = vsel %vm260_vm2, %v66_v53, %v243_v56 }
  0x92   :  { %4324 = vst [vmem:[#allocation4_spill] sm:$0xff] %v3407_v57  ;;  %4325 = vst [vmem:[#allocation5_spill] sm:$0xff] %v3410_v58  ;;  %v291_v59 = vmul.f32 %v3407_v57, %v3407_v57  ;;  %v292_v60 = vmul.f32 %v3410_v58, %v3410_v58 }
  0x94   :  { %2668 = vmatmul.mubr.msk.f32.gmra.mxu0 %vm296_vm3, %v290_v54 }
  0x95   :  { %2670 = vmatprep.mubr.msk.f32.mxu0 %vm296_vm3, %v291_v59 }
  0x98   :  { %2671 = vmatmul.mubr.msk.f32.gmra.mxu0 %vm296_vm3, %v292_v60 }
 0x13c   :  { %v3425_v4 = vpop.f32.mrf.mxu0 }
 0x13d   :  { %v495_v5 = vmax.f32 %v3425_v4, 4e-24  ;;  %v543_v6 = vmax.f32 %v3425_v4, 2e-24 }
 0x13e   :  { %v3429_v7 = vpop.f32.mrf.mxu0 }
 0x13f   :  { %2871 = vrsqrt.f32 %v495_v5  ;;  %v494_v8 = vmax.f32 %v3429_v7, 4e-24  ;;  %v542_v11 = vmax.f32 %v3429_v7, 2e-24 }
 0x140   :  { %2873 = vrsqrt.f32 %v543_v6  ;;  %v3433_v12 = vpop.f32.mrf.mxu0 }
 0x141   :  { %v497_v13 = vmax.f32 %v3433_v12, 4e-24  ;;  %2875 = vrsqrt.f32 %v494_v8  ;;  %v545_v19 = vmax.f32 %v3433_v12, 2e-24 }
 0x142   :  { %v3436_v14 = vpop.f32.mrf.mxu0  ;;  %2877 = vrsqrt.f32 %v542_v11 }
 0x143   :  { %2879 = vrsqrt.f32 %v497_v13  ;;  %v544_v15 = vmax.f32 %v3436_v14, 2e-24  ;;  %v496_v28 = vmax.f32 %v3436_v14, 4e-24 }
 0x144   :  { %v3439_v16 = vpop.f32.mrf.mxu0 }
 0x145   :  { %v547_v20 = vmax.f32 %v3439_v16, 2e-24  ;;  %2881 = vrsqrt.f32 %v544_v15  ;;  %v499_v32 = vmax.f32 %v3439_v16, 4e-24 }
 0x146   :  { %v3443_v21 = vpop.f32.mrf.mxu0  ;;  %2883 = vrsqrt.f32 %v545_v19 }
 0x147   :  { %v498_v22 = vmax.f32 %v3443_v21, 4e-24  ;;  %2885 = vrsqrt.f32 %v547_v20  ;;  %v546_v48 = vmax.f32 %v3443_v21, 2e-24 }
 0x148   :  { %v3446_v23 = vpop.f32.mrf.mxu0 }
 0x149   :  { %2887 = vrsqrt.f32 %v498_v22  ;;  %v501_v54 = vmax.f32 %v3446_v23, 4e-24  ;;  %v549_v13 = vmax.f32 %v3446_v23, 2e-24 }
 0x14a   :  { %v3450_v35 = vpop.f32.mrf.mxu0  ;;  %2889 = vrsqrt.f32 %v496_v28 }
 0x14b   :  { %v548_v37 = vmax.f32 %v3450_v35, 2e-24  ;;  %2891 = vrsqrt.f32 %v499_v32  ;;  %v3603_v57 = vmax.f32 %v3450_v35, 0.0 }
 0x14c   :  { %v2872_v24 = vpop.eup %2871  ;;  %v3453_v38 = vpop.f32.mrf.mxu0 }
 0x14d   :  { %v2874_v27 = vpop.eup %2873  ;;  %v527_v29 = vmul.f32 2.0, %v2872_v24  ;;  %v551_v44 = vmax.f32 %v3453_v38, 2e-24  ;;  %2893 = vrsqrt.f32 %v548_v37 }
 0x14e   :  { %v575_v30 = vmul.f32 1.4142135, %v2874_v27  ;;  %v2876_v31 = vpop.eup %2875  ;;  %v3458_v46 = vpop.f32.mrf.mxu0 }
 0x14f   :  { %725 = vperm.xlu1 %2845, %v527_v29   ;;  %v2878_v36 = vpop.eup %2877  ;;  %v526_v43 = vmul.f32 2.0, %v2876_v31  ;;  %2895 = vrsqrt.f32 %v551_v44  ;;  %v502_v56 = vmax.f32 %v3458_v46, 4e-24  ;;  %v500_v29 = vmax.f32 %v3450_v35, 4e-24 }
 0x150   :  { %821 = vperm.xlu0 %2846, %v575_v30   ;;  %v2880_v39 = vpop.eup %2879  ;;  %v574_v40 = vmul.f32 1.4142135, %v2878_v36  ;;  %v3461_v52 = vpop.f32.mrf.mxu0  ;;  %2897 = vrsqrt.f32 %v546_v48  ;;  %v503_v31 = vmax.f32 %v3453_v38, 4e-24 }
 0x151   :  { %v529_v45 = vmul.f32 2.0, %v2880_v39  ;;  %2899 = vrsqrt.f32 %v501_v54 }
 0x152   :  { %v2882_v47 = vpop.eup %2881  ;;  %v3467_v60 = vpop.f32.mrf.mxu0  ;;  %2901 = vrsqrt.f32 %v502_v56 }
 0x153   :  { %2848 = vset.pattern.permute.xlu1 %v3079_v0  ;;  %v576_v51 = vmul.f32 1.4142135, %v2882_v47  ;;  %v2884_v53 = vpop.eup %2883  ;;  %v552_v5 = vmax.f32 %v3467_v60, 2e-24 }
 0x154   :  { %2847 = vset.pattern.permute.xlu0 %v3080_v3  ;;  %816 = vperm.xlu1 %2848, %v574_v40   ;;  %v2886_v55 = vpop.eup %2885  ;;  %v577_v62 = vmul.f32 1.4142135, %v2884_v53  ;;  %v3471_v8 = vpop.f32.mrf.mxu0 }
 0x155   :  { %720 = vperm.xlu0 %2847, %v526_v43   ;;  %v579_v59 = vmul.f32 1.4142135, %v2886_v55  ;;  %2903 = vrsqrt.f32 %v552_v5  ;;  %v555_v22 = vmax.f32 %v3471_v8, 2e-24  ;;  %v505_v55 = vmax.f32 %v3461_v52, 4e-24 }
 0x156   :  { %v2888_v61 = vpop.eup %2887  ;;  %v3474_v19 = vpop.f32.mrf.mxu0  ;;  %2905 = vrsqrt.f32 %v549_v13 }
 0x157   :  { %v2890_v63 = vpop.eup %2889  ;;  %v530_v6 = vmul.f32 2.0, %v2888_v61  ;;  %2907 = vrsqrt.f32 %v555_v22  ;;  %v506_v36 = vmax.f32 %v3474_v19, 4e-24 }
 0x158   :  { %2849 = vset.pattern.permute.xlu1 %v3080_v3  ;;  %v2892_v11 = vpop.eup %2891  ;;  %v528_v15 = vmul.f32 2.0, %v2890_v63  ;;  %v3480_v30 = vpop.f32.mrf.mxu0  ;;  %2909 = vrsqrt.f32 %v500_v29 }
 0x159   :  { %2852 = vset.pattern.permute.xlu0 %v3079_v0  ;;  %735 = vperm.xlu1 %2849, %v529_v45   ;;  %v531_v24 = vmul.f32 2.0, %v2892_v11  ;;  %2911 = vrsqrt.f32 %v503_v31  ;;  %v553_v11 = vmax.f32 %v3461_v52, 2e-24 }
 0x15a   :  { %826 = vperm.xlu0 %2852, %v576_v51   ;;  %v2894_v20 = vpop.eup %2893  ;;  %v3485_v40 = vpop.f32.mrf.mxu0  ;;  %2913 = vrsqrt.f32 %v506_v36  ;;  %v550_v51 = vmax.f32 %v3458_v46, 2e-24 }
 0x15b   :  { %v580_v27 = vmul.f32 1.4142135, %v2894_v20  ;;  %v556_v45 = vmax.f32 %v3485_v40, 2e-24 }
 0x15c   :  { %v2896_v28 = vpop.eup %2895 }
 0x15d   :  { %2850 = vset.pattern.permute.xlu1 %v3079_v0  ;;  %v2898_v32 = vpop.eup %2897  ;;  %v583_v37 = vmul.f32 1.4142135, %v2896_v28  ;;  %2915 = vrsqrt.f32 %v556_v45  ;;  %v507_v28 = vmax.f32 %v3471_v8, 4e-24 }
 0x15e   :  { %841 = vperm.xlu0 %2852, %v579_v59   ;;  %831 = vperm.xlu1 %2850, %v577_v62   ;;  %v2900_v39 = vpop.eup %2899  ;;  %v578_v44 = vmul.f32 1.4142135, %v2898_v32  ;;  %2917 = vrsqrt.f32 %v550_v51 }
 0x15f   :  { %v2902_v43 = vpop.eup %2901  ;;  %v533_v48 = vmul.f32 2.0, %v2900_v39  ;;  %2919 = vrsqrt.f32 %v505_v55 }
 0x160   :  { %v534_v47 = vmul.f32 2.0, %v2902_v43  ;;  %2921 = vrsqrt.f32 %v553_v11  ;;  %v509_v43 = vmax.f32 %v3480_v30, 4e-24 }
 0x162   :  { %2853 = vset.pattern.permute.xlu0 %v3080_v3  ;;  %2851 = vset.pattern.permute.xlu1 %v3080_v3  ;;  %v2904_v53 = vpop.eup %2903 }
 0x163   :  { %740 = vperm.xlu0 %2853, %v530_v6   ;;  %730 = vperm.xlu1 %2851, %v528_v15   ;;  %v2906_v54 = vpop.eup %2905  ;;  %v584_v56 = vmul.f32 1.4142135, %v2904_v53 }
 0x164   :  { %v2908_v59 = vpop.eup %2907  ;;  %v581_v61 = vmul.f32 1.4142135, %v2906_v54  ;;  %v508_v54 = vmax.f32 %v3485_v40, 4e-24 }
 0x165   :  { %v2910_v62 = vpop.eup %2909  ;;  %v587_v63 = vmul.f32 1.4142135, %v2908_v59 }
 0x166   :  { %v2912_v5 = vpop.eup %2911  ;;  %v532_v13 = vmul.f32 2.0, %v2910_v62  ;;  %v3515_v62 = vpop.xlane.xlu0 %101 }
 0x167   :  { %2858 = vset.pattern.permute.xlu0 %v3079_v0  ;;  %745 = vperm.xlu1 %2851, %v531_v24   ;;  %v2914_v6 = vpop.eup %2913  ;;  %v535_v20 = vmul.f32 2.0, %v2912_v5  ;;  %v504_v24 = vmax.f32 %v3467_v60, 4e-24 }
 0x168   :  { %846 = vperm.xlu0 %2858, %v580_v27   ;;  %v538_v15 = vmul.f32 2.0, %v2914_v6  ;;  %v3520_v6 = vpop.xlane.xlu1 %104 }
 0x169   :  { %2923 = vrsqrt.f32 %v504_v24 }
 0x16a   :  { %v2916_v22 = vpop.eup %2915  ;;  %2925 = vrsqrt.f32 %v507_v28 }
 0x16b   :  { %2854 = vset.pattern.permute.xlu1 %v3079_v0  ;;  %v2918_v27 = vpop.eup %2917  ;;  %v588_v29 = vmul.f32 1.4142135, %v2916_v22 }
 0x16c   :  { %861 = vperm.xlu0 %2858, %v583_v37   ;;  %836 = vperm.xlu1 %2854, %v578_v44   ;;  %v2920_v31 = vpop.eup %2919  ;;  %v582_v32 = vmul.f32 1.4142135, %v2918_v27  ;;  %v554_v37 = vmax.f32 %v3474_v19, 2e-24  ;;  %v3526_v24 = vpop.xlane.xlu1 %113 }
 0x16d   :  { %v537_v36 = vmul.f32 2.0, %v2920_v31  ;;  %v2922_v39 = vpop.eup %2921 }
 0x16e   :  { %2927 = vrsqrt.f32 %v554_v37  ;;  %v585_v44 = vmul.f32 1.4142135, %v2922_v39  ;;  %v590_v37 = vmax.f32 %v3429_v7, 0.0 }
 0x16f   :  { %2929 = vrsqrt.f32 %v509_v43 }
 0x170   :  { %2859 = vset.pattern.permute.xlu0 %v3080_v3  ;;  %2855 = vset.pattern.permute.xlu1 %v3080_v3  ;;  %vm608_vm6 = vcmp.eq.f32.partialorder %v590_v37, inf  ;;  %vm610_vm7 = vcmp.eq.f32.partialorder %v590_v37, 0.0 }
 0x171   :  { %760 = vperm.xlu0 %2859, %v534_v47   ;;  %755 = vperm.xlu1 %2855, %v533_v48   ;;  %v557_v48 = vmax.f32 %v3480_v30, 2e-24 }
 0x173   :  { %2931 = vrsqrt.f32 %v557_v48 }
 0x174   :  { %2933 = vrsqrt.f32 %v508_v54 }
 0x175   :  { %2864 = vset.pattern.permute.xlu0 %v3079_v0  ;;  %2856 = vset.pattern.permute.xlu1 %v3079_v0 }
 0x176   :  { %866 = vperm.xlu0 %2864, %v584_v56   ;;  %851 = vperm.xlu1 %2856, %v581_v61   ;;  %v2924_v45 = vpop.eup %2923  ;;  %v3512_v56 = vld [vmem:[%s4308_s0 + $0x78] sm:$0xff] }
 0x177   :  { %v2926_v47 = vpop.eup %2925  ;;  %v536_v51 = vmul.f32 2.0, %v2924_v45 }
 0x178   :  { %v539_v53 = vmul.f32 2.0, %v2926_v47 }
 0x17a   :  { %881 = vperm.xlu0 %2864, %v587_v63   ;;  %2857 = vset.pattern.permute.xlu1 %v3080_v3  ;;  %v98_v63 = vmul.f32 %v3512_v56, %v3512_v56 }
 0x17b   :  { %750 = vperm.xlu1 %2857, %v532_v13   ;;  %v2928_v55 = vpop.eup %2927 }
 0x17c   :  { %v2930_v59 = vpop.eup %2929  ;;  %v586_v61 = vmul.f32 1.4142135, %v2928_v55  ;;  %v145_v11 = vsel %vm99_vm1, %v98_v63, 0.0  ;;  %v1087_v55 = vld [vmem:[%s4310_s4 + $0x8] sm:$0x3f] }
 0x17d   :  { %v541_v5 = vmul.f32 2.0, %v2930_v59  ;;  %2673 = vmatprep.subr.msk.mxu1 %vm345_vm0, %v1087_v55 }
 0x17e   :  { %2865 = vset.pattern.permute.xlu0 %v3080_v3  ;;  %2674 = vmatpush3.msk.msra.mxu1 %vm345_vm0, %v1087_v55 }
 0x17f   :  { %780 = vperm.xlu0 %2865, %v538_v15   ;;  %765 = vperm.xlu1 %2857, %v535_v20   ;;  %v3523_v15 = vpop.xlane.xlu0 %107 }
 0x180   :  { %v2932_v13 = vpop.eup %2931 }
 0x181   :  { %v589_v20 = vmul.f32 1.4142135, %v2932_v13  ;;  %v2934_v22 = vpop.eup %2933 }
 0x182   :  { %v540_v28 = vmul.f32 2.0, %v2934_v22 }
 0x183   :  { %2870 = vset.pattern.permute.xlu0 %v3079_v0  ;;  %2860 = vset.pattern.permute.xlu1 %v3079_v0  ;;  %v3528_v27 = vpop.xlane.xlu0 %110 }
 0x184   :  { %886 = vperm.xlu0 %2870, %v588_v29   ;;  %856 = vperm.xlu1 %2860, %v582_v32   ;;  %v3531_v29 = vpop.xlane.xlu1 %119  ;;  %v591_v32 = vmax.f32 %v3425_v4, 0.0  ;;  %v3551_v4 = vmax.f32 %v3436_v14, 0.0 }
 0x186   :  { %2935 = vrsqrt.f32 %v591_v32  ;;  %vm615_vm4 = vcmp.eq.f32.partialorder %v591_v32, inf  ;;  %v618_v59 = vand.u32 2147483648, %v591_v32  ;;  %vm617_vm5 = vcmp.eq.f32.partialorder %v591_v32, 0.0 }
 0x187   :  { %v3533_v31 = vpop.xlane.xlu0 %116  ;;  %2937 = vrsqrt.f32 %v590_v37  ;;  %vm622_vm10 = vcmp.eq.f32.partialorder %v3551_v4, inf  ;;  %vm624_vm13 = vcmp.eq.f32.partialorder %v3551_v4, 0.0 }
 0x188   :  { %2861 = vset.pattern.permute.xlu1 %v3080_v3 }
 0x189   :  { %775 = vperm.xlu1 %2861, %v537_v36   ;;  %v3536_v36 = vpop.xlane.xlu1 %125 }
 0x18d   :  { %2862 = vset.pattern.permute.xlu1 %v3079_v0  ;;  %v3541_v39 = vpop.xlane.xlu1 %131 }
 0x18e   :  { %871 = vperm.xlu1 %2862, %v585_v44  }
 0x191   :  { %v3546_v44 = vpop.xlane.xlu1 %137 }
 0x192   :  { %2863 = vset.pattern.permute.xlu1 %v3080_v3 }
 0x193   :  { %770 = vperm.xlu1 %2863, %v536_v51   ;;  %v2936_v47 = vpop.eup %2935 }
 0x194   :  { %v614_v48 = vmul.f32 %v2936_v47, %v591_v32 }
 0x195   :  { %v3553_v51 = vpop.xlane.xlu1 %143 }
 0x196   :  { %v616_v54 = vsel %vm615_vm4, %v591_v32, %v614_v48  ;;  %v611_v32 = vand.u32 2147483648, %v590_v37 }
 0x197   :  { %785 = vperm.xlu1 %2863, %v539_v53   ;;  %v2938_v53 = vpop.eup %2937 }
 0x198   :  { %v607_v14 = vmul.f32 %v2938_v53, %v590_v37  ;;  %v3587_v53 = vmax.f32 %v3446_v23, 0.0 }
 0x19a   :  { %v609_v22 = vsel %vm608_vm6, %v590_v37, %v607_v14  ;;  %vm659_vm6 = vcmp.eq.f32.partialorder %v3587_v53, 0.0 }
 0x19b   :  { %2866 = vset.pattern.permute.xlu1 %v3079_v0  ;;  %v612_v47 = vsel %vm610_vm7, %v611_v32, %v609_v22  ;;  %vm650_vm7 = vcmp.eq.f32.partialorder %v3603_v57, inf }
 0x19c   :  { %876 = vperm.xlu1 %2866, %v586_v61   ;;  %v1086_v61 = vld [vmem:[%s4310_s4] sm:$0xff] }
 0x19d   :  { %2675 = vmatprep.subr.mxu1 %v1086_v61 }
 0x19e   :  { %2676 = vmatpush3.msra.mxu1 %v1086_v61  ;;  %v1397_v61 = vlaneseq }
 0x1a0   :  { %2867 = vset.pattern.permute.xlu1 %v3080_v3  ;;  %v3597_v32 = vand.u32 127, %v1397_v61  ;;  %v3612_v61 = vmax.f32 %v3453_v38, 0.0 }
 0x1a1   :  { %795 = vperm.xlu1 %2867, %v541_v5   ;;  %v3573_v5 = vmax.f32 %v3443_v21, 0.0 }
 0x1a2   :  { %vm1399_vm12 = vcmp.lt.s32.totalorder %v3597_v32, 12  ;;  %v4329_v32 = vld [vmem:[#allocation5_spill] sm:$0xff] }
 0x1a3   :  { %146 = vadd.xlane.f32.xlu0 %v145_v11  ;;  %vm636_vm15 = vcmp.eq.f32.partialorder %v3573_v5, inf  ;;  %vm638_vm4 = vcmp.eq.f32.partialorder %v3573_v5, 0.0 }
 0x1a5   :  { %2868 = vset.pattern.permute.xlu1 %v3079_v0  ;;  %v3538_v0 = vpop.xlane.xlu0 %122 }
 0x1a6   :  { %891 = vperm.xlu1 %2868, %v589_v20  }
 0x1a9   :  { %v3543_v43 = vpop.xlane.xlu0 %128 }
 0x1aa   :  { %2869 = vset.pattern.permute.xlu1 %v3080_v3  ;;  %v593_v3 = vmax.f32 %v3433_v12, 0.0  ;;  %v3559_v12 = vmax.f32 %v3439_v16, 0.0  ;;  %v619_v16 = vsel %vm617_vm5, %v618_v59, %v616_v54  ;;  %vm657_vm5 = vcmp.eq.f32.partialorder %v3587_v53, inf }
 0x1ab   :  { %790 = vperm.xlu1 %2869, %v540_v28  }
 0x1ac   :  { %2939 = vrsqrt.f32 %v593_v3  ;;  %vm629_vm8 = vcmp.eq.f32.partialorder %v593_v3, inf  ;;  %vm631_vm9 = vcmp.eq.f32.partialorder %v593_v3, 0.0  ;;  %vm643_vm11 = vcmp.eq.f32.partialorder %v3559_v12, inf }
 0x1ad   :  { %v3548_v45 = vpop.xlane.xlu0 %134  ;;  %2941 = vrsqrt.f32 %v3551_v4  ;;  %vm645_vm14 = vcmp.eq.f32.partialorder %v3559_v12, 0.0 }
 0x1ae   :  { %2943 = vrsqrt.f32 %v3559_v12 }
 0x1af   :  { %2945 = vrsqrt.f32 %v3573_v5 }
 0x1b0   :  { %2947 = vrsqrt.f32 %v3587_v53 }
 0x1b1   :  { %v3555_v7 = vpop.xlane.xlu0 %140  ;;  %2949 = vrsqrt.f32 %v3603_v57 }
 0x1b2   :  { %2951 = vrsqrt.f32 %v3612_v61 }
 0x1b9   :  { %v2940_v28 = vpop.eup %2939 }
 0x1ba   :  { %v628_v55 = vmul.f32 %v2940_v28, %v593_v3  ;;  %v2942_v59 = vpop.eup %2941 }
 0x1bb   :  { %v621_v23 = vmul.f32 %v2942_v59, %v3551_v4  ;;  %v625_v59 = vand.u32 2147483648, %v3551_v4 }
 0x1ca   :  { %v3569_v63 = vpop.permute.xlu1 %725 }
 0x1cb   :  { %v799_v11 = vmul.f32 %v3569_v63, %v619_v16  ;;  %v3576_v13 = vpop.permute.xlu0 %821 }
 0x1cc   :  { %v895_v20 = vmul.f32 %v3576_v13, %v619_v16  ;;  %v630_v16 = vsel %vm629_vm8, %v593_v3, %v628_v55  ;;  %vm652_vm8 = vcmp.eq.f32.partialorder %v3603_v57, 0.0 }
 0x1cd   :  { %944 = vrot.lane.b32.xlu0 %v799_v11, %s3081_s23  ;;  %v632_v11 = vand.u32 2147483648, %v593_v3  ;;  %v623_v3 = vsel %vm622_vm10, %v3551_v4, %v621_v23  ;;  %vm673_vm10 = vcmp.eq.f32.partialorder %v3612_v61, 0.0 }
 0x1ce   :  { %1008 = vrot.lane.b32.xlu1 %v895_v20, %s3081_s23  ;;  %v2944_v20 = vpop.eup %2943 }
 0x1cf   :  { %v3582_v21 = vpop.permute.xlu1 %816  ;;  %v633_v22 = vsel %vm631_vm9, %v632_v11, %v630_v16  ;;  %v2946_v55 = vpop.eup %2945  ;;  %v646_v16 = vand.u32 2147483648, %v3559_v12  ;;  %vm671_vm9 = vcmp.eq.f32.partialorder %v3612_v61, inf }
 0x1d0   :  { %v3584_v48 = vpop.permute.xlu0 %720  ;;  %v894_v37 = vmul.f32 %v3582_v21, %v612_v47  ;;  %v635_v38 = vmul.f32 %v2946_v55, %v3573_v5  ;;  %v2948_v4 = vpop.eup %2947 }
 0x1d1   :  { %v798_v54 = vmul.f32 %v3584_v48, %v612_v47  ;;  %v642_v47 = vmul.f32 %v2944_v20, %v3559_v12 }
 0x1d3   :  { %942 = vrot.lane.b32.xlu1 %v798_v54, %s3081_s23  ;;  %v644_v20 = vsel %vm643_vm11, %v3559_v12, %v642_v47 }
 0x1d4   :  { %v3591_v14 = vpop.permute.xlu1 %735  ;;  %v647_v12 = vsel %vm645_vm14, %v646_v16, %v644_v20 }
 0x1d5   :  { %v827_v28 = vpop.permute.xlu0 %826  ;;  %v801_v54 = vmul.f32 %v3591_v14, %v633_v22 }
 0x1d7   :  { %1006 = vrot.lane.b32.xlu1 %v894_v37, %s3081_s23  ;;  %v626_v37 = vsel %vm624_vm13, %v625_v59, %v623_v3  ;;  %v639_v3 = vand.u32 2147483648, %v3573_v5  ;;  %v637_v59 = vsel %vm636_vm15, %v3573_v5, %v635_v38  ;;  %v660_v5 = vand.u32 2147483648, %v3587_v53 }
 0x1d8   :  { %v896_v55 = vmul.f32 %v827_v28, %v626_v37 }
 0x1d9   :  { %v3600_v58 = vpop.permute.xlu1 %831  ;;  %v842_v11 = vpop.permute.xlu0 %841  ;;  %v640_v16 = vsel %vm638_vm4, %v639_v3, %v637_v59 }
 0x1da   :  { %v897_v35 = vmul.f32 %v3600_v58, %v633_v22  ;;  %v3631_v22 = vmax.f32 %v3458_v46, 0.0  ;;  %v656_v46 = vmul.f32 %v2948_v4, %v3587_v53 }
 0x1db   :  { %948 = vrot.lane.b32.xlu1 %v801_v54, %s3081_s23 }
 0x1dc   :  { %2953 = vrsqrt.f32 %v3631_v22  ;;  %v658_v4 = vsel %vm657_vm5, %v3587_v53, %v656_v46  ;;  %v3663_v53 = vmax.f32 %v3467_v60, 0.0  ;;  %v653_v46 = vand.u32 2147483648, %v3603_v57 }
 0x1dd   :  { %v661_v3 = vsel %vm659_vm6, %v660_v5, %v658_v4  ;;  %v3676_v60 = vmax.f32 %v3471_v8, 0.0  ;;  %vm664_vm11 = vcmp.eq.f32.partialorder %v3631_v22, inf  ;;  %v3689_v8 = vmax.f32 %v3474_v19, 0.0 }
 0x1de   :  { %v731_v23 = vpop.permute.xlu1 %730  ;;  %v741_v49 = vpop.permute.xlu0 %740  ;;  %vm666_vm13 = vcmp.eq.f32.partialorder %v3631_v22, 0.0  ;;  %vm678_vm4 = vcmp.eq.f32.partialorder %v3663_v53, inf  ;;  %vm680_vm5 = vcmp.eq.f32.partialorder %v3663_v53, 0.0 }
 0x1df   :  { %v800_v54 = vmul.f32 %v731_v23, %v626_v37  ;;  %v3624_v50 = vsel %vm1399_vm12, %v731_v23, %v827_v28  ;;  %1012 = vrot.lane.b32.xlu1 %v897_v35, %s3081_s23  ;;  %v899_v28 = vmul.f32 %v842_v11, %v647_v12  ;;  %v802_v37 = vmul.f32 %v741_v49, %v640_v16 }
 0x1e0   :  { %vm699_vm6 = vcmp.eq.f32.partialorder %v3676_v60, inf }
 0x1e1   :  { %946 = vrot.lane.b32.xlu0 %v800_v54, %s3081_s23  ;;  %v3651_v54 = vmax.f32 %v3461_v52, 0.0 }
 0x1e2   :  { %v746_v47 = vpop.permute.xlu1 %745 }
 0x1e3   :  { %v803_v23 = vmul.f32 %v746_v47, %v647_v12  ;;  %v3637_v35 = vsel %vm1399_vm12, %v746_v47, %v842_v11  ;;  %v2950_v11 = vpop.eup %2949  ;;  %2955 = vrsqrt.f32 %v3651_v54  ;;  %v847_v59 = vpop.permute.xlu0 %846  ;;  %vm685_vm14 = vcmp.eq.f32.partialorder %v3651_v54, inf }
 0x1e4   :  { %v649_v52 = vmul.f32 %v2950_v11, %v3603_v57  ;;  %2957 = vrsqrt.f32 %v3663_v53  ;;  %v674_v11 = vand.u32 2147483648, %v3612_v61  ;;  %vm687_vm15 = vcmp.eq.f32.partialorder %v3651_v54, 0.0 }
 0x1e5   :  { %952 = vrot.lane.b32.xlu1 %v803_v23, %s3081_s23  ;;  %1010 = vrot.lane.b32.xlu0 %v896_v55, %s3081_s23  ;;  %v2952_v55 = vpop.eup %2951  ;;  %2959 = vrsqrt.f32 %v3676_v60 }
 0x1e6   :  { %2961 = vrsqrt.f32 %v3689_v8 }
 0x1e7   :  { %v837_v20 = vpop.permute.xlu1 %836 }
 0x1e8   :  { %v3647_v38 = vsel %vm1399_vm12, %v741_v49, %v837_v20  ;;  %v898_v12 = vmul.f32 %v837_v20, %v640_v16  ;;  %v670_v20 = vmul.f32 %v2952_v55, %v3612_v61 }
 0x1e9   :  { %1016 = vrot.lane.b32.xlu1 %v899_v28, %s3081_s23  ;;  %950 = vrot.lane.b32.xlu0 %v802_v37, %s3081_s23  ;;  %v651_v37 = vsel %vm650_vm7, %v3603_v57, %v649_v52  ;;  %v2954_v5 = vpop.eup %2953  ;;  %vm701_vm7 = vcmp.eq.f32.partialorder %v3676_v60, 0.0 }
 0x1ea   :  { %v654_v4 = vsel %vm652_vm8, %v653_v46, %v651_v37  ;;  %v672_v57 = vsel %vm671_vm9, %v3612_v61, %v670_v20  ;;  %v667_v61 = vand.u32 2147483648, %v3631_v22  ;;  %vm692_vm8 = vcmp.eq.f32.partialorder %v3689_v8, inf }
 0x1eb   :  { %vm694_vm9 = vcmp.eq.f32.partialorder %v3689_v8, 0.0 }
 0x1ec   :  { %v756_v47 = vpop.permute.xlu1 %755 }
 0x1ed   :  { %v805_v49 = vmul.f32 %v756_v47, %v661_v3  ;;  %1014 = vrot.lane.b32.xlu0 %v898_v12, %s3081_s23  ;;  %v862_v12 = vpop.permute.xlu0 %861 }
 0x1ef   :  { %956 = vrot.lane.b32.xlu1 %v805_v49, %s3081_s23 }
 0x1f0   :  { %v2956_v52 = vpop.eup %2955 }
 0x1f1   :  { %v852_v23 = vpop.permute.xlu1 %851  ;;  %v761_v19 = vpop.permute.xlu0 %760 }
 0x1f2   :  { %v901_v16 = vmul.f32 %v852_v23, %v661_v3  ;;  %v3668_v28 = vsel %vm1399_vm12, %v756_v47, %v852_v23  ;;  %v663_v47 = vmul.f32 %v2954_v5, %v3631_v22  ;;  %v675_v23 = vsel %vm673_vm10, %v674_v11, %v672_v57 }
 0x1f3   :  { %v684_v11 = vmul.f32 %v2956_v52, %v3651_v54 }
 0x1f4   :  { %1020 = vrot.lane.b32.xlu1 %v901_v16, %s3081_s23  ;;  %v900_v16 = vmul.f32 %v847_v59, %v654_v4  ;;  %v665_v37 = vsel %vm664_vm11, %v3631_v22, %v663_v47  ;;  %v688_v47 = vand.u32 2147483648, %v3651_v54 }
 0x1f5   :  { %v686_v52 = vsel %vm685_vm14, %v3651_v54, %v684_v11  ;;  %v3723_v54 = vmax.f32 %v3485_v40, 0.0  ;;  %v681_v11 = vand.u32 2147483648, %v3663_v53 }
 0x1f6   :  { %v751_v3 = vpop.permute.xlu1 %750 }
 0x1f7   :  { %v804_v49 = vmul.f32 %v751_v3, %v654_v4  ;;  %v3685_v55 = vsel %vm1399_vm12, %v751_v3, %v847_v59  ;;  %v668_v3 = vsel %vm666_vm13, %v667_v61, %v665_v37  ;;  %v903_v59 = vmul.f32 %v862_v12, %v675_v23 }
 0x1f8   :  { %v806_v4 = vmul.f32 %v761_v19, %v668_v3  ;;  %v689_v61 = vsel %vm687_vm15, %v688_v47, %v686_v52  ;;  %v702_v52 = vand.u32 2147483648, %v3676_v60  ;;  %vm706_vm13 = vcmp.eq.f32.partialorder %v3723_v54, inf }
 0x1f9   :  { %954 = vrot.lane.b32.xlu0 %v804_v49, %s3081_s23  ;;  %v3711_v49 = vmax.f32 %v3480_v30, 0.0  ;;  %vm708_vm14 = vcmp.eq.f32.partialorder %v3723_v54, 0.0  ;;  %vm1088_vm15 = vcmask 113664  }
 0x1fa   :  { %v766_v46 = vpop.permute.xlu1 %765 }
 0x1fb   :  { %v807_v20 = vmul.f32 %v766_v46, %v675_v23  ;;  %v3698_v5 = vsel %vm1399_vm12, %v766_v46, %v862_v12  ;;  %v2958_v12 = vpop.eup %2957  ;;  %2963 = vrsqrt.f32 %v3711_v49  ;;  %vm713_vm10 = vcmp.eq.f32.partialorder %v3711_v49, inf }
 0x1fc   :  { %v2960_v37 = vpop.eup %2959  ;;  %v677_v30 = vmul.f32 %v2958_v12, %v3663_v53  ;;  %2965 = vrsqrt.f32 %v3723_v54  ;;  %vm715_vm11 = vcmp.eq.f32.partialorder %v3711_v49, 0.0 }
 0x1fd   :  { %960 = vrot.lane.b32.xlu1 %v807_v20, %s3081_s23  ;;  %1018 = vrot.lane.b32.xlu0 %v900_v16, %s3081_s23  ;;  %v867_v20 = vpop.permute.xlu0 %866  ;;  %v2962_v47 = vpop.eup %2961 }
 0x1ff   :  { %v857_v22 = vpop.permute.xlu1 %856 }
 0x200   :  { %v3707_v57 = vsel %vm1399_vm12, %v761_v19, %v857_v22  ;;  %v902_v23 = vmul.f32 %v857_v22, %v668_v3  ;;  %v698_v22 = vmul.f32 %v2960_v37, %v3676_v60 }
 0x201   :  { %1024 = vrot.lane.b32.xlu1 %v903_v59, %s3081_s23  ;;  %958 = vrot.lane.b32.xlu0 %v806_v4, %s3081_s23  ;;  %v679_v4 = vsel %vm678_vm4, %v3663_v53, %v677_v30  ;;  %v882_v12 = vpop.permute.xlu0 %881  ;;  %v691_v53 = vmul.f32 %v2962_v47, %v3689_v8 }
 0x202   :  { %v682_v40 = vsel %vm680_vm5, %v681_v11, %v679_v4 }
 0x204   :  { %v776_v46 = vpop.permute.xlu1 %775 }
 0x205   :  { %v809_v16 = vmul.f32 %v776_v46, %v689_v61  ;;  %1022 = vrot.lane.b32.xlu0 %v902_v23, %s3081_s23  ;;  %v781_v47 = vpop.permute.xlu0 %780 }
 0x207   :  { %964 = vrot.lane.b32.xlu1 %v809_v16, %s3081_s23 }
 0x208   :  { %v2964_v37 = vpop.eup %2963 }
 0x209   :  { %v872_v19 = vpop.permute.xlu1 %871 }
 0x20a   :  { %v905_v3 = vmul.f32 %v872_v19, %v689_v61  ;;  %v3728_v59 = vsel %vm1399_vm12, %v776_v46, %v872_v19  ;;  %v700_v61 = vsel %vm699_vm6, %v3676_v60, %v698_v22  ;;  %v695_v19 = vand.u32 2147483648, %v3689_v8 }
 0x20b   :  { %v703_v30 = vsel %vm701_vm7, %v702_v52, %v700_v61  ;;  %v693_v60 = vsel %vm692_vm8, %v3689_v8, %v691_v53  ;;  %v712_v52 = vmul.f32 %v2964_v37, %v3711_v49  ;;  %v2966_v37 = vpop.eup %2965 }
 0x20c   :  { %1028 = vrot.lane.b32.xlu1 %v905_v3, %s3081_s23  ;;  %v904_v3 = vmul.f32 %v867_v20, %v682_v40  ;;  %v907_v61 = vmul.f32 %v882_v12, %v703_v30 }
 0x20d   :  { %v714_v53 = vsel %vm713_vm10, %v3711_v49, %v712_v52 }
 0x20e   :  { %v771_v23 = vpop.permute.xlu1 %770 }
 0x20f   :  { %v808_v46 = vmul.f32 %v771_v23, %v682_v40  ;;  %v3742_v16 = vsel %vm1399_vm12, %v771_v23, %v867_v20  ;;  %v696_v23 = vsel %vm694_vm9, %v695_v19, %v693_v60  ;;  %v716_v40 = vand.u32 2147483648, %v3711_v49 }
 0x210   :  { %v709_v49 = vand.u32 2147483648, %v3723_v54 }
 0x211   :  { %962 = vrot.lane.b32.xlu0 %v808_v46, %s3081_s23  ;;  %v810_v46 = vmul.f32 %v781_v47, %v696_v23 }
 0x212   :  { %v786_v11 = vpop.permute.xlu1 %785 }
 0x213   :  { %v811_v4 = vmul.f32 %v786_v11, %v703_v30  ;;  %v3751_v22 = vsel %vm1399_vm12, %v786_v11, %v882_v12  ;;  %v717_v11 = vsel %vm715_vm11, %v716_v40, %v714_v53 }
 0x215   :  { %968 = vrot.lane.b32.xlu1 %v811_v4, %s3081_s23  ;;  %1026 = vrot.lane.b32.xlu0 %v904_v3, %s3081_s23  ;;  %v705_v3 = vmul.f32 %v2966_v37, %v3723_v54  ;;  %v1436_v4 = vld [vmem:[%s4311_s5 + $0x10] sm:$0x3f] }
 0x216   :  { %2701 = vmatprep.subr.msk.mxu1 %vm345_vm0, %v1436_v4 }
 0x217   :  { %v877_v20 = vpop.permute.xlu1 %876 }
 0x218   :  { %v3759_v8 = vsel %vm1399_vm12, %v781_v47, %v877_v20  ;;  %v906_v19 = vmul.f32 %v877_v20, %v696_v23  ;;  %v707_v23 = vsel %vm706_vm13, %v3723_v54, %v705_v3  ;;  %v150_v54 = vmax.f32 %v3523_v15, 8e-24  ;;  %v3063_v15 = vld [vmem:[%s4308_s0 + $0x8] sm:$0xff] }
 0x219   :  { %1032 = vrot.lane.b32.xlu1 %v907_v61, %s3081_s23  ;;  %966 = vrot.lane.b32.xlu0 %v810_v46, %s3081_s23  ;;  %v710_v61 = vsel %vm708_vm14, %v709_v49, %v707_v23  ;;  %v887_v46 = vpop.permute.xlu0 %886 }
 0x21a   :  { %v908_v37 = vmul.f32 %v887_v46, %v710_v61 }
 0x21c   :  { %v796_v12 = vpop.permute.xlu1 %795 }
 0x21d   :  { %v813_v30 = vmul.f32 %v796_v12, %v717_v11  ;;  %1030 = vrot.lane.b32.xlu0 %v906_v19, %s3081_s23  ;;  %v149_v19 = vmax.f32 %v3520_v6, 8e-24 }
 0x21f   :  { %972 = vrot.lane.b32.xlu1 %v813_v30, %s3081_s23  ;;  %2967 = vrsqrt.f32 %v149_v19 }
 0x221   :  { %v892_v60 = vpop.permute.xlu1 %891 }
 0x222   :  { %v909_v47 = vmul.f32 %v892_v60, %v717_v11  ;;  %v3776_v52 = vsel %vm1399_vm12, %v796_v12, %v892_v60  ;;  %v148_v11 = vmax.f32 %v3515_v62, 8e-24  ;;  %v151_v12 = vmax.f32 %v3528_v27, 8e-24 }
 0x223   :  { %v153_v62 = vmax.f32 %v3533_v31, 8e-24 }
 0x224   :  { %1036 = vrot.lane.b32.xlu1 %v909_v47, %s3081_s23  ;;  %2969 = vrsqrt.f32 %v148_v11 }
 0x225   :  { %2971 = vrsqrt.f32 %v150_v54  ;;  %v1435_v54 = vld [vmem:[%s4311_s5 + $0x8] sm:$0xff] }
 0x226   :  { %v791_v20 = vpop.permute.xlu1 %790  ;;  %2973 = vrsqrt.f32 %v151_v12  ;;  %v1434_v12 = vld [vmem:[%s4311_s5] sm:$0xff] }
 0x227   :  { %v812_v40 = vmul.f32 %v791_v20, %v710_v61  ;;  %v3784_v53 = vsel %vm1399_vm12, %v791_v20, %v887_v46  ;;  %v152_v61 = vmax.f32 %v3526_v24, 8e-24  ;;  %v3064_v20 = vld [vmem:[%s4308_s0] sm:$0xff] }
 0x229   :  { %970 = vrot.lane.b32.xlu0 %v812_v40, %s3081_s23  ;;  %2975 = vrsqrt.f32 %v152_v61 }
 0x22a   :  { %2977 = vrsqrt.f32 %v153_v62 }
 0x22c   :  { %v2968_v30 = vpop.eup %2967  ;;  %v3792_v3 = vpop.xlane.xlu0 %146 }
 0x22d   :  { %1034 = vrot.lane.b32.xlu0 %v908_v37, %s3081_s23  ;;  %v181_v47 = vmul.f32 2.828427, %v2968_v30 }
 0x22f   :  { %v911_v27 = vmul.f32 %v3063_v15, %v181_v47 }
 0x231   :  { %v2970_v60 = vpop.eup %2969 }
 0x232   :  { %v180_v23 = vmul.f32 2.828427, %v2970_v60  ;;  %v2972_v30 = vpop.eup %2971 }
 0x233   :  { %v2974_v47 = vpop.eup %2973 }
 0x234   :  { %v910_v40 = vmul.f32 %v3064_v20, %v180_v23  ;;  %v182_v23 = vmul.f32 2.828427, %v2972_v30  ;;  %v3066_v20 = vld [vmem:[%s4308_s0 + $0x18] sm:$0xff] }
 0x236   :  { %v2976_v15 = vpop.eup %2975 }
 0x23f   :  { %v945_v6 = vpop.permute.xlu0 %944 }
 0x240   :  { %v1009_v49 = vpop.permute.xlu1 %1008  ;;  %v1055_v37 = vsel %vm99_vm1, %v911_v27, %v945_v6  ;;  %v155_v27 = vmax.f32 %v3538_v0, 8e-24 }
 0x241   :  { %v1071_v11 = vsel %vm260_vm2, %v1055_v37, %v1009_v49  ;;  %v183_v49 = vmul.f32 2.828427, %v2974_v47  ;;  %v2978_v37 = vpop.eup %2977  ;;  %v156_v47 = vmax.f32 %v3536_v36, 8e-24 }
 0x242   :  { %v185_v0 = vmul.f32 2.828427, %v2978_v37 }
 0x245   :  { %v943_v46 = vpop.permute.xlu1 %942 }
 0x246   :  { %v1054_v24 = vsel %vm99_vm1, %v910_v40, %v943_v46  ;;  %v154_v46 = vmax.f32 %v3531_v29, 8e-24  ;;  %v913_v40 = vmul.f32 %v3066_v20, %v183_v49  ;;  %v157_v49 = vmax.f32 %v3543_v43, 8e-24 }
 0x248   :  { %2979 = vrsqrt.f32 %v154_v46 }
 0x249   :  { %v1007_v19 = vpop.permute.xlu1 %1006  ;;  %2981 = vrsqrt.f32 %v155_v27 }
 0x24a   :  { %v1070_v31 = vsel %vm260_vm2, %v1054_v24, %v1007_v19  ;;  %2983 = vrsqrt.f32 %v156_v47 }
 0x24b   :  { %2677 = vmatprep.mubr.msk.f32.mxu1 %vm1088_vm15, %v1070_v31  ;;  %2985 = vrsqrt.f32 %v157_v49 }
 0x24c   :  { %2678 = vmatmul.mubr.msk.f32.vlgmr.msra.gmra.mxu1 %vm1088_vm15, %v1071_v11 }
 0x24d   :  { %2702 = vmatpush3.msk.msra.mxu1 %vm345_vm0, %v1436_v4  ;;  %v949_v60 = vpop.permute.xlu1 %948  ;;  %v3065_v4 = vld [vmem:[%s4308_s0 + $0x10] sm:$0xff]  ;;  %vm1636_vm0 = vcmask 195584  }
 0x24e   :  { %2703 = vmatprep.subr.mxu1 %v1435_v54  ;;  %v912_v62 = vmul.f32 %v3065_v4, %v182_v23  ;;  %v1057_v31 = vsel %vm99_vm1, %v913_v40, %v949_v60  ;;  %v3067_v60 = vld [vmem:[%s4308_s0 + $0x20] sm:$0xff] }
 0x24f   :  { %2704 = vmatpush3.msra.mxu1 %v1435_v54  ;;  %v184_v54 = vmul.f32 2.828427, %v2976_v15 }
 0x250   :  { %2705 = vmatprep.subr.mxu1 %v1434_v12 }
 0x251   :  { %2706 = vmatpush3.msra.mxu1 %v1434_v12  ;;  %v1013_v6 = vpop.permute.xlu1 %1012  ;;  %v914_v23 = vmul.f32 %v3067_v60, %v184_v54 }
 0x252   :  { %v1073_v12 = vsel %vm260_vm2, %v1057_v31, %v1013_v6 }
 0x253   :  { %v947_v61 = vpop.permute.xlu0 %946 }
 0x254   :  { %v1056_v24 = vsel %vm99_vm1, %v912_v62, %v947_v61  ;;  %v3068_v61 = vld [vmem:[%s4308_s0 + $0x28] sm:$0xff] }
 0x255   :  { %v915_v6 = vmul.f32 %v3068_v61, %v185_v0  ;;  %v2980_v43 = vpop.eup %2979  ;;  %v159_v0 = vmax.f32 %v3548_v45, 8e-24 }
 0x256   :  { %v2982_v40 = vpop.eup %2981  ;;  %v186_v37 = vmul.f32 2.828427, %v2980_v43  ;;  %v161_v43 = vmax.f32 %v3555_v7, 8e-24 }
 0x257   :  { %v1011_v19 = vpop.permute.xlu0 %1010  ;;  %v953_v29 = vpop.permute.xlu1 %952 }
 0x258   :  { %v1072_v11 = vsel %vm260_vm2, %v1056_v24, %v1011_v19  ;;  %v1059_v15 = vsel %vm99_vm1, %v915_v6, %v953_v29  ;;  %v187_v24 = vmul.f32 2.828427, %v2982_v40  ;;  %v3069_v29 = vld [vmem:[%s4308_s0 + $0x30] sm:$0xff] }
 0x259   :  { %2680 = vmatprep.mubr.msk.f32.mxu1 %vm1088_vm15, %v1072_v11  ;;  %v158_v11 = vmax.f32 %v3541_v39, 8e-24  ;;  %v916_v54 = vmul.f32 %v3069_v29, %v186_v37 }
 0x25a   :  { %2681 = vmatmul.mubr.msk.f32.gmra.mxu1 %vm1088_vm15, %v1073_v12  ;;  %v2984_v12 = vpop.eup %2983 }
 0x25b   :  { %v951_v30 = vpop.permute.xlu0 %950  ;;  %v1017_v46 = vpop.permute.xlu1 %1016  ;;  %2987 = vrsqrt.f32 %v158_v11 }
 0x25c   :  { %v1058_v4 = vsel %vm99_vm1, %v914_v23, %v951_v30  ;;  %v1075_v27 = vsel %vm260_vm2, %v1059_v15, %v1017_v46  ;;  %v3070_v30 = vld [vmem:[%s4308_s0 + $0x38] sm:$0xff]  ;;  %v2986_v60 = vpop.eup %2985  ;;  %v188_v46 = vmul.f32 2.828427, %v2984_v12  ;;  %2989 = vrsqrt.f32 %v159_v0 }
 0x25d   :  { %v917_v47 = vmul.f32 %v3070_v30, %v187_v24  ;;  %v189_v45 = vmul.f32 2.828427, %v2986_v60  ;;  %v160_v15 = vmax.f32 %v3546_v44, 8e-24  ;;  %v162_v60 = vmax.f32 %v3553_v51, 8e-24 }
 0x25f   :  { %v1015_v62 = vpop.permute.xlu0 %1014  ;;  %2991 = vrsqrt.f32 %v160_v15 }
 0x260   :  { %v1074_v36 = vsel %vm260_vm2, %v1058_v4, %v1015_v62  ;;  %2993 = vrsqrt.f32 %v161_v43 }
 0x261   :  { %2683 = vmatprep.mubr.msk.f32.mxu1 %vm1088_vm15, %v1074_v36  ;;  %v957_v20 = vpop.permute.xlu1 %956  ;;  %v3071_v36 = vld [vmem:[%s4308_s0 + $0x40] sm:$0xff]  ;;  %2995 = vrsqrt.f32 %v162_v60 }
 0x262   :  { %2684 = vmatmul.mubr.msk.f32.gmra.mxu1 %vm1088_vm15, %v1075_v27  ;;  %v1061_v61 = vsel %vm99_vm1, %v917_v47, %v957_v20  ;;  %v918_v27 = vmul.f32 %v3071_v36, %v188_v46  ;;  %v3072_v20 = vld [vmem:[%s4308_s0 + $0x48] sm:$0xff] }
 0x263   :  { %v919_v40 = vmul.f32 %v3072_v20, %v189_v45 }
 0x266   :  { %v1021_v31 = vpop.permute.xlu1 %1020 }
 0x267   :  { %v1077_v4 = vsel %vm260_vm2, %v1061_v61, %v1021_v31 }
 0x268   :  { %v2988_v7 = vpop.eup %2987 }
 0x269   :  { %v190_v12 = vmul.f32 2.828427, %v2988_v7 }
 0x26b   :  { %v955_v19 = vpop.permute.xlu0 %954 }
 0x26c   :  { %v1060_v23 = vsel %vm99_vm1, %v916_v54, %v955_v19  ;;  %v2990_v54 = vpop.eup %2989 }
 0x26d   :  { %v191_v0 = vmul.f32 2.828427, %v2990_v54  ;;  %v2992_v61 = vpop.eup %2991 }
 0x26f   :  { %v1019_v49 = vpop.permute.xlu0 %1018  ;;  %v961_v39 = vpop.permute.xlu1 %960 }
 0x270   :  { %v1076_v6 = vsel %vm260_vm2, %v1060_v23, %v1019_v49  ;;  %v1063_v31 = vsel %vm99_vm1, %v919_v40, %v961_v39  ;;  %v3073_v23 = vld [vmem:[%s4308_s0 + $0x50] sm:$0xff]  ;;  %v163_v39 = vmax.f32 %v3792_v3, 8e-24  ;;  %v3075_v40 = vld [vmem:[%s4308_s0 + $0x60] sm:$0xff] }
 0x271   :  { %2686 = vmatprep.mubr.msk.f32.mxu1 %vm1088_vm15, %v1076_v6  ;;  %v920_v49 = vmul.f32 %v3073_v23, %v190_v12  ;;  %v3074_v6 = vld [vmem:[%s4308_s0 + $0x58] sm:$0xff] }
 0x272   :  { %2687 = vmatmul.mubr.msk.f32.gmra.mxu1 %vm1088_vm15, %v1077_v4  ;;  %v921_v46 = vmul.f32 %v3074_v6, %v191_v0  ;;  %v2994_v4 = vpop.eup %2993  ;;  %2997 = vrsqrt.f32 %v163_v39  ;;  %v1402_v39 = vsel %vm1399_vm12, %v3584_v48, %v3582_v21  ;;  %v1405_v21 = vsel %vm1399_vm12, %v3591_v14, %v3600_v58  ;;  %v4328_v48 = vld [vmem:[#allocation4_spill] sm:$0xff] }
 0x273   :  { %v959_v62 = vpop.permute.xlu0 %958  ;;  %v1025_v37 = vpop.permute.xlu1 %1024  ;;  %v193_v3 = vmul.f32 2.828427, %v2994_v4  ;;  %v1424_v58 = vmul.f32 %v3685_v55, %v3335_v25  ;;  %v1429_v25 = vmul.f32 %v3728_v59, %v3374_v42  ;;  %v1635_v14 = vld [vmem:[%s4312_s6 + $0x10] sm:$0xff]  ;;  %v1634_v42 = vld [vmem:[%s4312_s6 + $0x8] sm:$0xff] }
 0x274   :  { %v1062_v24 = vsel %vm99_vm1, %v918_v27, %v959_v62  ;;  %v1079_v11 = vsel %vm260_vm2, %v1063_v31, %v1025_v37  ;;  %v192_v27 = vmul.f32 2.828427, %v2992_v61  ;;  %v2996_v12 = vpop.eup %2995  ;;  %2731 = vmatprep.subr.mxu0 %v1635_v14  ;;  %v1848_v55 = vld [vmem:[%s4313_s7 + $0x10] sm:$0xff] }
 0x275   :  { %2732 = vmatpush3.msra.mxu0 %v1635_v14 }
 0x276   :  { %v922_v37 = vmul.f32 %v3075_v40, %v192_v27  ;;  %2733 = vmatprep.subr.mxu0 %v1634_v42 }
 0x277   :  { %v1023_v19 = vpop.permute.xlu0 %1022  ;;  %2734 = vmatpush3.msra.mxu0 %v1634_v42 }
 0x278   :  { %v1078_v44 = vsel %vm260_vm2, %v1062_v24, %v1023_v19  ;;  %v3076_v24 = vld [vmem:[%s4308_s0 + $0x68] sm:$0xff] }
 0x279   :  { %2689 = vmatprep.mubr.msk.f32.mxu1 %vm1088_vm15, %v1078_v44  ;;  %v965_v29 = vpop.permute.xlu1 %964  ;;  %v923_v19 = vmul.f32 %v3076_v24, %v193_v3  ;;  %v1846_v24 = vld [vmem:[%s4313_s7] sm:$0xff] }
 0x27a   :  { %2690 = vmatmul.mubr.msk.f32.gmra.mxu1 %vm1088_vm15, %v1079_v11  ;;  %v1065_v15 = vsel %vm99_vm1, %v921_v46, %v965_v29 }
 0x27e   :  { %v1029_v47 = vpop.permute.xlu1 %1028 }
 0x27f   :  { %v1081_v43 = vsel %vm260_vm2, %v1065_v15, %v1029_v47  ;;  %v2998_v0 = vpop.eup %2997  ;;  %v194_v47 = vmul.f32 2.828427, %v2996_v12 }
 0x280   :  { %v195_v60 = vmul.f32 2.828427, %v2998_v0 }
 0x282   :  { %v925_v6 = vmul.f32 %v195_v60, %v3512_v56 }
 0x283   :  { %v963_v30 = vpop.permute.xlu0 %962 }
 0x284   :  { %v1064_v45 = vsel %vm99_vm1, %v920_v49, %v963_v30  ;;  %v3077_v49 = vld [vmem:[%s4308_s0 + $0x70] sm:$0xff] }
 0x285   :  { %v924_v61 = vmul.f32 %v3077_v49, %v194_v47 }
 0x287   :  { %v1027_v62 = vpop.permute.xlu0 %1026  ;;  %v969_v51 = vpop.permute.xlu1 %968 }
 0x288   :  { %v1080_v36 = vsel %vm260_vm2, %v1064_v45, %v1027_v62  ;;  %v1067_v7 = vsel %vm99_vm1, %v923_v19, %v969_v51  ;;  %v1403_v51 = vsel %vm1399_vm12, %v3569_v63, %v3576_v13  ;;  %v1420_v63 = vmul.f32 %v3624_v50, %v3285_v2  ;;  %v4327_v50 = vld [vmem:[#allocation3_spill] sm:$0xff] }
 0x289   :  { %2692 = vmatprep.mubr.msk.f32.mxu1 %vm1088_vm15, %v1080_v36  ;;  %v1418_v36 = vmul.f32 %v1402_v39, %v3282_v1  ;;  %v1419_v56 = vmul.f32 %v1403_v51, %v3299_v9  ;;  %v1421_v1 = vmul.f32 %v1405_v21, %v3302_v10  ;;  %v1422_v13 = vmul.f32 %v3647_v38, %v3316_v17  ;;  %v1633_v38 = vld [vmem:[%s4312_s6] sm:$0xff] }
 0x28a   :  { %2693 = vmatmul.mubr.msk.f32.gmra.mxu1 %vm1088_vm15, %v1081_v43  ;;  %v1423_v9 = vmul.f32 %v3637_v35, %v3320_v18  ;;  %v1425_v2 = vmul.f32 %v3668_v28, %v3338_v26  ;;  %v1426_v10 = vmul.f32 %v3707_v57, %v3353_v33  ;;  %v1427_v17 = vmul.f32 %v3698_v5, %v3356_v34  ;;  %v4326_v26 = vld [vmem:[#allocation2_spill] sm:$0xff]  ;;  %v1849_v28 = vld [vmem:[%s4313_s7 + $0x18] sm:$0xff] }
 0x28b   :  { %v967_v20 = vpop.permute.xlu0 %966  ;;  %v1033_v31 = vpop.permute.xlu1 %1032  ;;  %v1428_v18 = vmul.f32 %v3742_v16, %v3371_v41  ;;  %v1430_v33 = vmul.f32 %v3759_v8, %v4326_v26  ;;  %v1431_v34 = vmul.f32 %v3751_v22, %v4327_v50  ;;  %v1432_v41 = vmul.f32 %v3784_v53, %v4328_v48  ;;  %2735 = vmatprep.subr.mxu0 %v1633_v38 }
 0x28c   :  { %v1066_v44 = vsel %vm99_vm1, %v922_v37, %v967_v20  ;;  %v1083_v54 = vsel %vm260_vm2, %v1067_v7, %v1033_v31  ;;  %v1433_v35 = vmul.f32 %v3776_v52, %v4329_v32  ;;  %2736 = vmatpush3.msra.mxu0 %v1633_v38  ;;  %2761 = vmatprep.subr.mxu1 %v1849_v28  ;;  %v1847_v37 = vld [vmem:[%s4313_s7 + $0x8] sm:$0xff]  ;;  %s3082_s7 = smov 104   ;;  %vm2103_vm12 = vcmask 719872  }
 0x28f   :  { %v1031_v11 = vpop.permute.xlu0 %1030 }
 0x290   :  { %v1082_v29 = vsel %vm260_vm2, %v1066_v44, %v1031_v11 }
 0x291   :  { %2695 = vmatprep.mubr.msk.f32.mxu1 %vm1088_vm15, %v1082_v29  ;;  %v973_v30 = vpop.permute.xlu1 %972 }
 0x292   :  { %2696 = vmatmul.mubr.msk.f32.gmra.mxu1 %vm1088_vm15, %v1083_v54  ;;  %v1069_v62 = vsel %vm99_vm1, %v925_v6, %v973_v30 }
 0x296   :  { %v1037_v46 = vpop.permute.xlu1 %1036 }
 0x297   :  { %v1085_v27 = vsel %vm260_vm2, %v1069_v62, %v1037_v46 }
 0x29b   :  { %v971_v23 = vpop.permute.xlu0 %970 }
 0x29c   :  { %v1068_v4 = vsel %vm99_vm1, %v924_v61, %v971_v23 }
 0x29f   :  { %v1035_v45 = vpop.permute.xlu0 %1034 }
 0x2a0   :  { %v1084_v15 = vsel %vm260_vm2, %v1068_v4, %v1035_v45 }
 0x2a1   :  { %2698 = vmatprep.mubr.msk.f32.mxu1 %vm1088_vm15, %v1084_v15 }
 0x2a2   :  { %2699 = vmatmul.mubr.msk.f32.gmra.mxu1 %vm1088_vm15, %v1085_v27 }
 0x2a3   :  { %2707 = vmatprep.mubr.msk.f32.mxu1 %vm296_vm3, %v1418_v36 }
 0x2a6   :  { %2708 = vmatmul.mubr.msk.f32.vlgmr.msra.gmra.mxu1 %vm296_vm3, %v1419_v56 }
 0x2a7   :  { %2710 = vmatprep.mubr.msk.f32.mxu1 %vm296_vm3, %v1420_v63  ;;  %2762 = vmatpush3.msra.mxu1 %v1849_v28 }
 0x2a8   :  { %2763 = vmatprep.subr.mxu1 %v1848_v55 }
 0x2a9   :  { %2764 = vmatpush3.msra.mxu1 %v1848_v55  ;;  %v2102_v55 = vld [vmem:[%s4314_s8 + $0x50] sm:$0xff] }
 0x2aa   :  { %2711 = vmatmul.mubr.msk.f32.gmra.mxu1 %vm296_vm3, %v1421_v1  ;;  %2765 = vmatprep.subr.mxu1 %v1847_v37 }
 0x2ab   :  { %2713 = vmatprep.mubr.msk.f32.mxu1 %vm296_vm3, %v1422_v13  ;;  %2766 = vmatpush3.msra.mxu1 %v1847_v37 }
 0x2ac   :  { %2767 = vmatprep.subr.mxu1 %v1846_v24  ;;  %2793 = vmatprep.subr.mxu0 %v2102_v55 }
 0x2ad   :  { %2768 = vmatpush3.msra.mxu1 %v1846_v24 }
 0x2ae   :  { %2714 = vmatmul.mubr.msk.f32.gmra.mxu1 %vm296_vm3, %v1423_v9 }
 0x2af   :  { %2716 = vmatprep.mubr.msk.f32.mxu1 %vm296_vm3, %v1424_v58 }
 0x2b2   :  { %2717 = vmatmul.mubr.msk.f32.gmra.mxu1 %vm296_vm3, %v1425_v2 }
 0x2b3   :  { %2719 = vmatprep.mubr.msk.f32.mxu1 %vm296_vm3, %v1426_v10 }
 0x2b6   :  { %2720 = vmatmul.mubr.msk.f32.gmra.mxu1 %vm296_vm3, %v1427_v17 }
 0x2b7   :  { %2722 = vmatprep.mubr.msk.f32.mxu1 %vm296_vm3, %v1428_v18 }
 0x2ba   :  { %2723 = vmatmul.mubr.msk.f32.gmra.mxu1 %vm296_vm3, %v1429_v25 }
 0x2bb   :  { %2725 = vmatprep.mubr.msk.f32.mxu1 %vm296_vm3, %v1430_v33 }
 0x2be   :  { %2726 = vmatmul.mubr.msk.f32.gmra.mxu1 %vm296_vm3, %v1431_v34 }
 0x2bf   :  { %2728 = vmatprep.mubr.msk.f32.mxu1 %vm296_vm3, %v1432_v41 }
 0x2c2   :  { %2729 = vmatmul.mubr.msk.f32.gmra.mxu1 %vm296_vm3, %v1433_v35  ;;  %vm1898_vm3 = vcmask 261120  }
 0x30c   :  { %v2679_v5 = vpop.f32.mrf.mxu1 }
 0x30d   :  { %v2441_v57 = vmul.f32 -1.442695, %v2679_v5 }
 0x30e   :  { %v1206_v59 = vpop.f32.mrf.mxu1 }
 0x30f   :  { %2999 = vpow2.f32 %v2441_v57  ;;  %v2440_v16 = vmul.f32 -1.442695, %v1206_v59 }
 0x311   :  { %3001 = vpow2.f32 %v2440_v16 }
 0x31a   :  { %v2682_v22 = vpop.f32.mrf.mxu1 }
 0x31b   :  { %v2443_v8 = vmul.f32 -1.442695, %v2682_v22 }
 0x31c   :  { %v3000_v52 = vpop.eup %2999  ;;  %v1216_v53 = vpop.f32.mrf.mxu1 }
 0x31d   :  { %v1334_v43 = vadd.f32 1.0, %v3000_v52  ;;  %3003 = vpow2.f32 %v2443_v8  ;;  %v2442_v3 = vmul.f32 -1.442695, %v1216_v53 }
 0x31e   :  { %v3002_v20 = vpop.eup %3001 }
 0x31f   :  { %3005 = vrcp.f32 %v1334_v43  ;;  %v1333_v40 = vadd.f32 1.0, %v3002_v20 }
 0x320   :  { %3007 = vpow2.f32 %v2442_v3 }
 0x321   :  { %3009 = vrcp.f32 %v1333_v40  ;;  %v2101_v40 = vld [vmem:[%s4314_s8 + $0x48] sm:$0xff] }
 0x322   :  { %v2685_v19 = vpop.f32.mrf.mxu1 }
 0x323   :  { %v2445_v31 = vmul.f32 -1.442695, %v2685_v19 }
 0x324   :  { %v1226_v44 = vpop.f32.mrf.mxu1 }
 0x325   :  { %3011 = vpow2.f32 %v2445_v31  ;;  %v2444_v11 = vmul.f32 -1.442695, %v1226_v44 }
 0x327   :  { %3013 = vpow2.f32 %v2444_v11 }
 0x32a   :  { %v3004_v7 = vpop.eup %3003 }
 0x32b   :  { %v1336_v29 = vadd.f32 1.0, %v3004_v7  ;;  %v2100_v7 = vld [vmem:[%s4314_s8 + $0x40] sm:$0xff] }
 0x32c   :  { %v3006_v54 = vpop.eup %3005 }
 0x32d   :  { %v3008_v12 = vpop.eup %3007  ;;  %v1382_v0 = vmul.f32 %v3006_v54, %v2679_v5  ;;  %3015 = vrcp.f32 %v1336_v29  ;;  %v2099_v29 = vld [vmem:[%s4314_s8 + $0x38] sm:$0xff] }
 0x32e   :  { %v3010_v30 = vpop.eup %3009  ;;  %v1335_v47 = vadd.f32 1.0, %v3008_v12 }
 0x32f   :  { %v1381_v60 = vmul.f32 %v3010_v30, %v1206_v59  ;;  %1868 = vrot.lane.b32.xlu1 %v1382_v0, %s3082_s7  ;;  %2737 = vmatprep.mubr.msk.f32.mxu0 %vm1636_vm0, %v3010_v30  ;;  %v2098_v0 = vld [vmem:[%s4314_s8 + $0x30] sm:$0xff]  ;;  %v2097_v30 = vld [vmem:[%s4314_s8 + $0x28] sm:$0xff] }
 0x330   :  { %3017 = vrcp.f32 %v1335_v47  ;;  %2738 = vmatmul.mubr.msk.f32.vlgmr.msra.gmra.mxu0 %vm1636_vm0, %v3006_v54 }
 0x331   :  { %1866 = vrot.lane.b32.xlu0 %v1381_v60, %s3082_s7  ;;  %2794 = vmatpush3.msra.mxu0 %v2102_v55  ;;  %v2096_v60 = vld [vmem:[%s4314_s8 + $0x20] sm:$0xff] }
 0x332   :  { %v3012_v23 = vpop.eup %3011  ;;  %v2688_v49 = vpop.f32.mrf.mxu1  ;;  %2795 = vmatprep.subr.mxu0 %v2101_v40 }
 0x333   :  { %v1338_v61 = vadd.f32 1.0, %v3012_v23  ;;  %v2447_v39 = vmul.f32 -1.442695, %v2688_v49  ;;  %2796 = vmatpush3.msra.mxu0 %v2101_v40 }
 0x334   :  { %v3014_v6 = vpop.eup %3013  ;;  %v1236_v46 = vpop.f32.mrf.mxu1  ;;  %2797 = vmatprep.subr.mxu0 %v2100_v7 }
 0x335   :  { %3019 = vrcp.f32 %v1338_v61  ;;  %v1337_v4 = vadd.f32 1.0, %v3014_v6  ;;  %v2446_v45 = vmul.f32 -1.442695, %v1236_v46  ;;  %2798 = vmatpush3.msra.mxu0 %v2100_v7  ;;  %v2094_v6 = vld [vmem:[%s4314_s8 + $0x10] sm:$0xff] }
 0x336   :  { %3021 = vpow2.f32 %v2447_v39  ;;  %2799 = vmatprep.subr.mxu0 %v2099_v29  ;;  %v2095_v39 = vld [vmem:[%s4314_s8 + $0x18] sm:$0xff] }
 0x337   :  { %3023 = vrcp.f32 %v1337_v4  ;;  %2800 = vmatpush3.msra.mxu0 %v2099_v29 }
 0x338   :  { %3025 = vpow2.f32 %v2446_v45  ;;  %2801 = vmatprep.subr.mxu0 %v2098_v0 }
 0x339   :  { %2802 = vmatpush3.msra.mxu0 %v2098_v0 }
 0x33a   :  { %v3016_v62 = vpop.eup %3015  ;;  %v2691_v15 = vpop.f32.mrf.mxu1  ;;  %2803 = vmatprep.subr.mxu0 %v2097_v30 }
 0x33b   :  { %v1384_v51 = vmul.f32 %v3016_v62, %v2682_v22  ;;  %v2449_v36 = vmul.f32 -1.442695, %v2691_v15  ;;  %2804 = vmatpush3.msra.mxu0 %v2097_v30 }
 0x33c   :  { %v1246_v27 = vpop.f32.mrf.mxu1  ;;  %2805 = vmatprep.subr.mxu0 %v2096_v60 }
 0x33d   :  { %v3018_v56 = vpop.eup %3017  ;;  %3027 = vpow2.f32 %v2449_v36  ;;  %v2448_v21 = vmul.f32 -1.442695, %v1246_v27  ;;  %1872 = vrot.lane.b32.xlu1 %v1384_v51, %s3082_s7  ;;  %2806 = vmatpush3.msra.mxu0 %v2096_v60 }
 0x33e   :  { %v1383_v63 = vmul.f32 %v3018_v56, %v1216_v53  ;;  %2740 = vmatprep.mubr.msk.f32.mxu0 %vm1636_vm0, %v3018_v56  ;;  %2807 = vmatprep.subr.mxu0 %v2095_v39  ;;  %v2092_v56 = vld [vmem:[%s4314_s8] sm:$0xff] }
 0x33f   :  { %3029 = vpow2.f32 %v2448_v21  ;;  %2741 = vmatmul.mubr.msk.f32.gmra.mxu0 %vm1636_vm0, %v3016_v62  ;;  %v2093_v62 = vld [vmem:[%s4314_s8 + $0x8] sm:$0xff] }
 0x340   :  { %1870 = vrot.lane.b32.xlu0 %v1383_v63, %s3082_s7  ;;  %2808 = vmatpush3.msra.mxu0 %v2095_v39 }
 0x341   :  { %2809 = vmatprep.subr.mxu0 %v2094_v6 }
 0x342   :  { %v3020_v1 = vpop.eup %3019  ;;  %2810 = vmatpush3.msra.mxu0 %v2094_v6 }
 0x343   :  { %v3022_v13 = vpop.eup %3021  ;;  %v1386_v9 = vmul.f32 %v3020_v1, %v2685_v19  ;;  %2811 = vmatprep.subr.mxu0 %v2093_v62 }
 0x344   :  { %v3024_v58 = vpop.eup %3023  ;;  %v1340_v2 = vadd.f32 1.0, %v3022_v13  ;;  %2812 = vmatpush3.msra.mxu0 %v2093_v62 }
 0x345   :  { %v3026_v10 = vpop.eup %3025  ;;  %v1385_v17 = vmul.f32 %v3024_v58, %v1226_v44  ;;  %1876 = vrot.lane.b32.xlu1 %v1386_v9, %s3082_s7  ;;  %2743 = vmatprep.mubr.msk.f32.mxu0 %vm1636_vm0, %v3024_v58 }
 0x346   :  { %3031 = vrcp.f32 %v1340_v2  ;;  %v1339_v18 = vadd.f32 1.0, %v3026_v10  ;;  %2744 = vmatmul.mubr.msk.f32.gmra.mxu0 %vm1636_vm0, %v3020_v1  ;;  %2813 = vmatprep.subr.mxu0 %v2092_v56 }
 0x347   :  { %1874 = vrot.lane.b32.xlu0 %v1385_v17, %s3082_s7  ;;  %2814 = vmatpush3.msra.mxu0 %v2092_v56 }
 0x348   :  { %3033 = vrcp.f32 %v1339_v18 }
 0x34a   :  { %v3028_v25 = vpop.eup %3027  ;;  %v3997_v26 = vpop.f32.mrf.mxu1 }
 0x34b   :  { %v1342_v33 = vadd.f32 1.0, %v3028_v25  ;;  %v2451_v50 = vmul.f32 -1.442695, %v3997_v26 }
 0x34c   :  { %v3030_v34 = vpop.eup %3029  ;;  %v4000_v48 = vpop.f32.mrf.mxu1 }
 0x34d   :  { %3035 = vrcp.f32 %v1342_v33  ;;  %v1341_v41 = vadd.f32 1.0, %v3030_v34  ;;  %v2450_v14 = vmul.f32 -1.442695, %v4000_v48 }
 0x34e   :  { %3037 = vpow2.f32 %v2451_v50 }
 0x34f   :  { %3039 = vrcp.f32 %v1341_v41 }
 0x350   :  { %3041 = vpow2.f32 %v2450_v14 }
 0x352   :  { %v4003_v42 = vpop.f32.mrf.mxu1 }
 0x353   :  { %v3032_v32 = vpop.eup %3031  ;;  %v2453_v35 = vmul.f32 -1.442695, %v4003_v42 }
 0x354   :  { %v1388_v38 = vmul.f32 %v3032_v32, %v2688_v49  ;;  %v4006_v28 = vpop.f32.mrf.mxu1 }
 0x355   :  { %v3034_v5 = vpop.eup %3033  ;;  %3043 = vpow2.f32 %v2453_v35  ;;  %v2452_v57 = vmul.f32 -1.442695, %v4006_v28 }
 0x356   :  { %v1387_v59 = vmul.f32 %v3034_v5, %v1236_v46  ;;  %1880 = vrot.lane.b32.xlu1 %v1388_v38, %s3082_s7  ;;  %2746 = vmatprep.mubr.msk.f32.mxu0 %vm1636_vm0, %v3034_v5 }
 0x357   :  { %3045 = vpow2.f32 %v2452_v57  ;;  %2747 = vmatmul.mubr.msk.f32.gmra.mxu0 %vm1636_vm0, %v3032_v32 }
 0x358   :  { %1878 = vrot.lane.b32.xlu0 %v1387_v59, %s3082_s7 }
 0x35a   :  { %v3036_v16 = vpop.eup %3035 }
 0x35b   :  { %v3038_v22 = vpop.eup %3037  ;;  %v1390_v8 = vmul.f32 %v3036_v16, %v2691_v15 }
 0x35c   :  { %v3040_v52 = vpop.eup %3039  ;;  %v1344_v53 = vadd.f32 1.0, %v3038_v22 }
 0x35d   :  { %v3042_v43 = vpop.eup %3041  ;;  %v1389_v3 = vmul.f32 %v3040_v52, %v1246_v27  ;;  %1884 = vrot.lane.b32.xlu1 %v1390_v8, %s3082_s7  ;;  %2749 = vmatprep.mubr.msk.f32.mxu0 %vm1636_vm0, %v3040_v52 }
 0x35e   :  { %3047 = vrcp.f32 %v1344_v53  ;;  %v1343_v20 = vadd.f32 1.0, %v3042_v43  ;;  %2750 = vmatmul.mubr.msk.f32.gmra.mxu0 %vm1636_vm0, %v3036_v16 }
 0x35f   :  { %1882 = vrot.lane.b32.xlu0 %v1389_v3, %s3082_s7 }
 0x360   :  { %3049 = vrcp.f32 %v1343_v20 }
 0x362   :  { %v3044_v37 = vpop.eup %3043  ;;  %v2700_v24 = vpop.f32.mrf.mxu1 }
 0x363   :  { %v1346_v19 = vadd.f32 1.0, %v3044_v37  ;;  %v2455_v31 = vmul.f32 -1.442695, %v2700_v24 }
 0x364   :  { %v3046_v44 = vpop.eup %3045  ;;  %v1276_v11 = vpop.f32.mrf.mxu1 }
 0x365   :  { %3051 = vrcp.f32 %v1346_v19  ;;  %v1345_v54 = vadd.f32 1.0, %v3046_v44  ;;  %v2454_v12 = vmul.f32 -1.442695, %v1276_v11 }
 0x366   :  { %3053 = vpow2.f32 %v2455_v31  ;;  %v2709_v32 = vpop.f32.mrf.mxu1 }
 0x367   :  { %3055 = vrcp.f32 %v1345_v54 }
 0x368   :  { %3057 = vpow2.f32 %v2454_v12  ;;  %v1554_v38 = vpop.f32.mrf.mxu1 }
 0x36a   :  { %v2712_v16 = vpop.f32.mrf.mxu1 }
 0x36b   :  { %v3048_v47 = vpop.eup %3047 }
 0x36c   :  { %v1392_v23 = vmul.f32 %v3048_v47, %v3997_v26  ;;  %v1564_v8 = vpop.f32.mrf.mxu1 }
 0x36d   :  { %v3050_v49 = vpop.eup %3049 }
 0x36e   :  { %v1391_v61 = vmul.f32 %v3050_v49, %v4000_v48  ;;  %1888 = vrot.lane.b32.xlu1 %v1392_v23, %s3082_s7  ;;  %2752 = vmatprep.mubr.msk.f32.mxu0 %vm1636_vm0, %v3050_v49  ;;  %v2715_v3 = vpop.f32.mrf.mxu1 }
 0x36f   :  { %2753 = vmatmul.mubr.msk.f32.gmra.mxu0 %vm1636_vm0, %v3048_v47 }
 0x370   :  { %1886 = vrot.lane.b32.xlu0 %v1391_v61, %s3082_s7  ;;  %v1574_v40 = vpop.f32.mrf.mxu1 }
 0x372   :  { %v3052_v46 = vpop.eup %3051  ;;  %v2718_v31 = vpop.f32.mrf.mxu1 }
 0x373   :  { %v3054_v4 = vpop.eup %3053  ;;  %v1394_v45 = vmul.f32 %v3052_v46, %v4003_v42 }
 0x374   :  { %v3056_v15 = vpop.eup %3055  ;;  %v1348_v51 = vadd.f32 1.0, %v3054_v4 }
 0x375   :  { %v3058_v36 = vpop.eup %3057  ;;  %v1393_v27 = vmul.f32 %v3056_v15, %v4006_v28  ;;  %1892 = vrot.lane.b32.xlu1 %v1394_v45, %s3082_s7  ;;  %2755 = vmatprep.mubr.msk.f32.mxu0 %vm1636_vm0, %v3056_v15 }
 0x376   :  { %3059 = vrcp.f32 %v1348_v51  ;;  %v1347_v21 = vadd.f32 1.0, %v3058_v36  ;;  %2756 = vmatmul.mubr.msk.f32.gmra.mxu0 %vm1636_vm0, %v3052_v46 }
 0x377   :  { %1890 = vrot.lane.b32.xlu0 %v1393_v27, %s3082_s7 }
 0x378   :  { %3061 = vrcp.f32 %v1347_v21 }
 0x383   :  { %v3060_v63 = vpop.eup %3059 }
 0x384   :  { %v1396_v1 = vmul.f32 %v3060_v63, %v2700_v24 }
 0x385   :  { %v3062_v13 = vpop.eup %3061 }
 0x386   :  { %v1395_v9 = vmul.f32 %v3062_v13, %v1276_v11  ;;  %1896 = vrot.lane.b32.xlu1 %v1396_v1, %s3082_s7  ;;  %2758 = vmatprep.mubr.msk.f32.mxu0 %vm1636_vm0, %v3062_v13  ;;  %v1584_v11 = vpop.f32.mrf.mxu1 }
 0x387   :  { %2759 = vmatmul.mubr.msk.f32.gmra.mxu0 %vm1636_vm0, %v3060_v63 }
 0x388   :  { %1894 = vrot.lane.b32.xlu0 %v1395_v9, %s3082_s7  ;;  %v2721_v12 = vpop.f32.mrf.mxu1 }
 0x38a   :  { %v1594_v30 = vpop.f32.mrf.mxu1 }
 0x38c   :  { %v2724_v49 = vpop.f32.mrf.mxu1 }
 0x38e   :  { %v1604_v39 = vpop.f32.mrf.mxu1 }
 0x390   :  { %v2727_v45 = vpop.f32.mrf.mxu1 }
 0x392   :  { %v1614_v15 = vpop.f32.mrf.mxu1 }
 0x394   :  { %v2730_v56 = vpop.f32.mrf.mxu1 }
 0x396   :  { %v1624_v63 = vpop.f32.mrf.mxu1 }
 0x3a1   :  { %v1869_v2 = vpop.permute.xlu1 %1868 }
 0x3a3   :  { %v1867_v58 = vpop.permute.xlu0 %1866 }
 0x3a4   :  { %2769 = vmatprep.mubr.msk.f32.mxu1 %vm1898_vm3, %v1867_v58 }
 0x3a5   :  { %2770 = vmatmul.mubr.msk.f32.vlgmr.msra.gmra.mxu1 %vm1898_vm3, %v1869_v2 }
 0x3af   :  { %v1873_v17 = vpop.permute.xlu1 %1872 }
 0x3b2   :  { %v1871_v10 = vpop.permute.xlu0 %1870 }
 0x3b3   :  { %2772 = vmatprep.mubr.msk.f32.mxu1 %vm1898_vm3, %v1871_v10 }
 0x3b4   :  { %2773 = vmatmul.mubr.msk.f32.gmra.mxu1 %vm1898_vm3, %v1873_v17 }
 0x3b7   :  { %v1877_v25 = vpop.permute.xlu1 %1876 }
 0x3b9   :  { %v1875_v18 = vpop.permute.xlu0 %1874 }
 0x3ba   :  { %2775 = vmatprep.mubr.msk.f32.mxu1 %vm1898_vm3, %v1875_v18 }
 0x3bb   :  { %2776 = vmatmul.mubr.msk.f32.gmra.mxu1 %vm1898_vm3, %v1877_v25 }
 0x3c8   :  { %v1881_v33 = vpop.permute.xlu1 %1880 }
 0x3ca   :  { %v1879_v26 = vpop.permute.xlu0 %1878 }
 0x3cb   :  { %2778 = vmatprep.mubr.msk.f32.mxu1 %vm1898_vm3, %v1879_v26 }
 0x3cc   :  { %2779 = vmatmul.mubr.msk.f32.gmra.mxu1 %vm1898_vm3, %v1881_v33 }
 0x3cf   :  { %v1885_v34 = vpop.permute.xlu1 %1884 }
 0x3d1   :  { %v1883_v50 = vpop.permute.xlu0 %1882 }
 0x3d2   :  { %2781 = vmatprep.mubr.msk.f32.mxu1 %vm1898_vm3, %v1883_v50 }
 0x3d3   :  { %2782 = vmatmul.mubr.msk.f32.gmra.mxu1 %vm1898_vm3, %v1885_v34 }
 0x3e0   :  { %v1889_v41 = vpop.permute.xlu1 %1888 }
 0x3e2   :  { %v1887_v48 = vpop.permute.xlu0 %1886 }
 0x3e3   :  { %2784 = vmatprep.mubr.msk.f32.mxu1 %vm1898_vm3, %v1887_v48 }
 0x3e4   :  { %2785 = vmatmul.mubr.msk.f32.gmra.mxu1 %vm1898_vm3, %v1889_v41 }
 0x3e7   :  { %v1893_v42 = vpop.permute.xlu1 %1892 }
 0x3e9   :  { %v1891_v14 = vpop.permute.xlu0 %1890 }
 0x3ea   :  { %2787 = vmatprep.mubr.msk.f32.mxu1 %vm1898_vm3, %v1891_v14 }
 0x3eb   :  { %2788 = vmatmul.mubr.msk.f32.gmra.mxu1 %vm1898_vm3, %v1893_v42 }
 0x3f0   :  { %v2739_v35 = vpop.f32.mrf.mxu0 }
 0x3f1   :  { %v1831_v5 = vmul.f32 %v2739_v35, %v2709_v32 }
 0x3f2   :  { %v1751_v28 = vpop.f32.mrf.mxu0 }
 0x3f3   :  { %v1830_v55 = vmul.f32 %v1751_v28, %v1554_v38 }
 0x3f5   :  { %2815 = vmatprep.mubr.msk.f32.mxu0 %vm2103_vm12, %v1830_v55 }
 0x3f6   :  { %2816 = vmatmul.mubr.msk.f32.vlgmr.msra.gmra.mxu0 %vm2103_vm12, %v1831_v5 }
 0x3f8   :  { %v1897_v59 = vpop.permute.xlu1 %1896 }
 0x3fa   :  { %v1895_v57 = vpop.permute.xlu0 %1894 }
 0x3fb   :  { %2790 = vmatprep.mubr.msk.f32.mxu1 %vm1898_vm3, %v1895_v57 }
 0x3fc   :  { %2791 = vmatmul.mubr.msk.f32.gmra.mxu1 %vm1898_vm3, %v1897_v59 }
 0x3ff   :  { %v2742_v22 = vpop.f32.mrf.mxu0 }
 0x400   :  { %v1833_v43 = vmul.f32 %v2742_v22, %v2712_v16 }
 0x401   :  { %v1761_v52 = vpop.f32.mrf.mxu0 }
 0x402   :  { %v1832_v53 = vmul.f32 %v1761_v52, %v1564_v8 }
 0x404   :  { %2818 = vmatprep.mubr.msk.f32.mxu0 %vm2103_vm12, %v1832_v53 }
 0x405   :  { %2819 = vmatmul.mubr.msk.f32.gmra.mxu0 %vm2103_vm12, %v1833_v43 }
 0x406   :  { %v2745_v20 = vpop.f32.mrf.mxu0 }
 0x407   :  { %v1835_v19 = vmul.f32 %v2745_v20, %v2715_v3 }
 0x408   :  { %v1771_v37 = vpop.f32.mrf.mxu0 }
 0x409   :  { %v1834_v24 = vmul.f32 %v1771_v37, %v1574_v40 }
 0x40b   :  { %2821 = vmatprep.mubr.msk.f32.mxu0 %vm2103_vm12, %v1834_v24 }
 0x40c   :  { %2822 = vmatmul.mubr.msk.f32.gmra.mxu0 %vm2103_vm12, %v1835_v19 }
 0x417   :  { %v2748_v44 = vpop.f32.mrf.mxu0 }
 0x418   :  { %v1837_v54 = vmul.f32 %v2748_v44, %v2718_v31 }
 0x419   :  { %v1781_v7 = vpop.f32.mrf.mxu0 }
 0x41a   :  { %v1836_v29 = vmul.f32 %v1781_v7, %v1584_v11 }
 0x41c   :  { %2824 = vmatprep.mubr.msk.f32.mxu0 %vm2103_vm12, %v1836_v29 }
 0x41d   :  { %2825 = vmatmul.mubr.msk.f32.gmra.mxu0 %vm2103_vm12, %v1837_v54 }
 0x41e   :  { %v2751_v0 = vpop.f32.mrf.mxu0 }
 0x41f   :  { %v1839_v23 = vmul.f32 %v2751_v0, %v2721_v12 }
 0x420   :  { %v1791_v47 = vpop.f32.mrf.mxu0 }
 0x421   :  { %v1838_v60 = vmul.f32 %v1791_v47, %v1594_v30 }
 0x423   :  { %2827 = vmatprep.mubr.msk.f32.mxu0 %vm2103_vm12, %v1838_v60 }
 0x424   :  { %2828 = vmatmul.mubr.msk.f32.gmra.mxu0 %vm2103_vm12, %v1839_v23 }
 0x42f   :  { %v2754_v61 = vpop.f32.mrf.mxu0 }
 0x430   :  { %v1841_v4 = vmul.f32 %v2754_v61, %v2724_v49 }
 0x431   :  { %v1801_v6 = vpop.f32.mrf.mxu0 }
 0x432   :  { %v1840_v46 = vmul.f32 %v1801_v6, %v1604_v39 }
 0x434   :  { %2830 = vmatprep.mubr.msk.f32.mxu0 %vm2103_vm12, %v1840_v46 }
 0x435   :  { %2831 = vmatmul.mubr.msk.f32.gmra.mxu0 %vm2103_vm12, %v1841_v4 }
 0x436   :  { %v2757_v62 = vpop.f32.mrf.mxu0 }
 0x437   :  { %v1843_v27 = vmul.f32 %v2757_v62, %v2727_v45 }
 0x438   :  { %v1811_v51 = vpop.f32.mrf.mxu0 }
 0x439   :  { %v1842_v36 = vmul.f32 %v1811_v51, %v1614_v15 }
 0x43b   :  { %2833 = vmatprep.mubr.msk.f32.mxu0 %vm2103_vm12, %v1842_v36 }
 0x43c   :  { %2834 = vmatmul.mubr.msk.f32.gmra.mxu0 %vm2103_vm12, %v1843_v27 }
 0x447   :  { %v2760_v21 = vpop.f32.mrf.mxu0 }
 0x448   :  { %v1845_v9 = vmul.f32 %v2760_v21, %v2730_v56 }
 0x449   :  { %v1821_v1 = vpop.f32.mrf.mxu0 }
 0x44a   :  { %v1844_v13 = vmul.f32 %v1821_v1, %v1624_v63 }
 0x44c   :  { %2836 = vmatprep.mubr.msk.f32.mxu0 %vm2103_vm12, %v1844_v13 }
 0x44d   :  { %2837 = vmatmul.mubr.msk.f32.gmra.mxu0 %vm2103_vm12, %v1845_v9 }
 0x465   :  { %v2771_v58 = vpop.f32.mrf.mxu1 }
 0x466   :  { %2077 = vst.msk [vmem:[%s4315_s9 + $0x8] sm:$0xff] %vm99_vm1, %v2771_v58 }
 0x467   :  { %v1997_v2 = vpop.f32.mrf.mxu1 }
 0x468   :  { %2076 = vst.msk [vmem:[%s4315_s9] sm:$0xff] %vm99_vm1, %v1997_v2 }
 0x474   :  { %v2774_v10 = vpop.f32.mrf.mxu1 }
 0x475   :  { %2079 = vst.msk [vmem:[%s4315_s9 + $0x18] sm:$0xff] %vm99_vm1, %v2774_v10 }
 0x476   :  { %v2007_v17 = vpop.f32.mrf.mxu1 }
 0x477   :  { %2078 = vst.msk [vmem:[%s4315_s9 + $0x10] sm:$0xff] %vm99_vm1, %v2007_v17 }
 0x47b   :  { %v2777_v18 = vpop.f32.mrf.mxu1 }
 0x47c   :  { %2081 = vst.msk [vmem:[%s4315_s9 + $0x28] sm:$0xff] %vm99_vm1, %v2777_v18 }
 0x47d   :  { %v2017_v25 = vpop.f32.mrf.mxu1 }
 0x47e   :  { %2080 = vst.msk [vmem:[%s4315_s9 + $0x20] sm:$0xff] %vm99_vm1, %v2017_v25 }
 0x48c   :  { %v2780_v26 = vpop.f32.mrf.mxu1 }
 0x48d   :  { %2083 = vst.msk [vmem:[%s4315_s9 + $0x38] sm:$0xff] %vm99_vm1, %v2780_v26 }
 0x48e   :  { %v2027_v33 = vpop.f32.mrf.mxu1 }
 0x48f   :  { %2082 = vst.msk [vmem:[%s4315_s9 + $0x30] sm:$0xff] %vm99_vm1, %v2027_v33 }
 0x493   :  { %v2783_v50 = vpop.f32.mrf.mxu1 }
 0x494   :  { %2085 = vst.msk [vmem:[%s4315_s9 + $0x48] sm:$0xff] %vm99_vm1, %v2783_v50 }
 0x495   :  { %v2037_v34 = vpop.f32.mrf.mxu1 }
 0x496   :  { %2084 = vst.msk [vmem:[%s4315_s9 + $0x40] sm:$0xff] %vm99_vm1, %v2037_v34 }
 0x4a4   :  { %v2786_v48 = vpop.f32.mrf.mxu1 }
 0x4a5   :  { %2087 = vst.msk [vmem:[%s4315_s9 + $0x58] sm:$0xff] %vm99_vm1, %v2786_v48 }
 0x4a6   :  { %v2047_v41 = vpop.f32.mrf.mxu1 }
 0x4a7   :  { %2086 = vst.msk [vmem:[%s4315_s9 + $0x50] sm:$0xff] %vm99_vm1, %v2047_v41 }
 0x4ab   :  { %v2789_v14 = vpop.f32.mrf.mxu1 }
 0x4ac   :  { %2089 = vst.msk [vmem:[%s4315_s9 + $0x68] sm:$0xff] %vm99_vm1, %v2789_v14 }
 0x4ad   :  { %v2057_v42 = vpop.f32.mrf.mxu1 }
 0x4ae   :  { %2088 = vst.msk [vmem:[%s4315_s9 + $0x60] sm:$0xff] %vm99_vm1, %v2057_v42 }
 0x4b6   :  { %v2817_v32 = vpop.f32.mrf.mxu0 }
 0x4b7   :  { %2298 = vst.msk [vmem:[%s4316_s10 + $0x8] sm:$0xff] %vm260_vm2, %v2817_v32  ;;  %2331 = vrot.lane.b32.xlu1 %v2817_v32, %s3083_s20 }
 0x4b8   :  { %v2218_v35 = vpop.f32.mrf.mxu0 }
 0x4b9   :  { %2297 = vst.msk [vmem:[%s4316_s10] sm:$0xff] %vm260_vm2, %v2218_v35  ;;  %2329 = vrot.lane.b32.xlu0 %v2218_v35, %s3083_s20 }
 0x4bc   :  { %v2792_v38 = vpop.f32.mrf.mxu1 }
 0x4bd   :  { %2091 = vst.msk [vmem:[%s4315_s9 + $0x78] sm:$0xff] %vm99_vm1, %v2792_v38 }
 0x4be   :  { %v2067_v28 = vpop.f32.mrf.mxu1 }
 0x4bf   :  { %2090 = vst.msk [vmem:[%s4315_s9 + $0x70] sm:$0xff] %vm99_vm1, %v2067_v28  ;;  %vm2377_vm1 = vcmask 80896  }
 0x4c5   :  { %v2820_v55 = vpop.f32.mrf.mxu0 }
 0x4c6   :  { %2300 = vst.msk [vmem:[%s4316_s10 + $0x18] sm:$0xff] %vm260_vm2, %v2820_v55  ;;  %2335 = vrot.lane.b32.xlu1 %v2820_v55, %s3083_s20 }
 0x4c7   :  { %v2228_v5 = vpop.f32.mrf.mxu0 }
 0x4c8   :  { %2299 = vst.msk [vmem:[%s4316_s10 + $0x10] sm:$0xff] %vm260_vm2, %v2228_v5  ;;  %2333 = vrot.lane.b32.xlu0 %v2228_v5, %s3083_s20 }
 0x4cc   :  { %v2823_v57 = vpop.f32.mrf.mxu0 }
 0x4cd   :  { %2302 = vst.msk [vmem:[%s4316_s10 + $0x28] sm:$0xff] %vm260_vm2, %v2823_v57  ;;  %2339 = vrot.lane.b32.xlu1 %v2823_v57, %s3083_s20 }
 0x4ce   :  { %v2238_v59 = vpop.f32.mrf.mxu0 }
 0x4cf   :  { %2301 = vst.msk [vmem:[%s4316_s10 + $0x20] sm:$0xff] %vm260_vm2, %v2238_v59  ;;  %2337 = vrot.lane.b32.xlu0 %v2238_v59, %s3083_s20 }
 0x4dd   :  { %v2826_v16 = vpop.f32.mrf.mxu0 }
 0x4de   :  { %2304 = vst.msk [vmem:[%s4316_s10 + $0x38] sm:$0xff] %vm260_vm2, %v2826_v16  ;;  %2343 = vrot.lane.b32.xlu1 %v2826_v16, %s3083_s20 }
 0x4df   :  { %v2248_v22 = vpop.f32.mrf.mxu0 }
 0x4e0   :  { %2303 = vst.msk [vmem:[%s4316_s10 + $0x30] sm:$0xff] %vm260_vm2, %v2248_v22  ;;  %2341 = vrot.lane.b32.xlu0 %v2248_v22, %s3083_s20 }
 0x4e4   :  { %v2829_v8 = vpop.f32.mrf.mxu0 }
 0x4e5   :  { %2306 = vst.msk [vmem:[%s4316_s10 + $0x48] sm:$0xff] %vm260_vm2, %v2829_v8  ;;  %2347 = vrot.lane.b32.xlu1 %v2829_v8, %s3083_s20 }
 0x4e6   :  { %v2258_v52 = vpop.f32.mrf.mxu0 }
 0x4e7   :  { %2305 = vst.msk [vmem:[%s4316_s10 + $0x40] sm:$0xff] %vm260_vm2, %v2258_v52  ;;  %2345 = vrot.lane.b32.xlu0 %v2258_v52, %s3083_s20 }
 0x4f5   :  { %v2832_v53 = vpop.f32.mrf.mxu0 }
 0x4f6   :  { %2308 = vst.msk [vmem:[%s4316_s10 + $0x58] sm:$0xff] %vm260_vm2, %v2832_v53  ;;  %2351 = vrot.lane.b32.xlu1 %v2832_v53, %s3083_s20 }
 0x4f7   :  { %v2268_v43 = vpop.f32.mrf.mxu0 }
 0x4f8   :  { %2307 = vst.msk [vmem:[%s4316_s10 + $0x50] sm:$0xff] %vm260_vm2, %v2268_v43  ;;  %2349 = vrot.lane.b32.xlu0 %v2268_v43, %s3083_s20 }
 0x4fc   :  { %v2835_v3 = vpop.f32.mrf.mxu0 }
 0x4fd   :  { %2310 = vst.msk [vmem:[%s4316_s10 + $0x68] sm:$0xff] %vm260_vm2, %v2835_v3  ;;  %2355 = vrot.lane.b32.xlu1 %v2835_v3, %s3083_s20 }
 0x4fe   :  { %v2278_v20 = vpop.f32.mrf.mxu0 }
 0x4ff   :  { %2309 = vst.msk [vmem:[%s4316_s10 + $0x60] sm:$0xff] %vm260_vm2, %v2278_v20  ;;  %2353 = vrot.lane.b32.xlu0 %v2278_v20, %s3083_s20 }
 0x50d   :  { %v2838_v40 = vpop.f32.mrf.mxu0 }
 0x50e   :  { %2312 = vst.msk [vmem:[%s4316_s10 + $0x78] sm:$0xff] %vm260_vm2, %v2838_v40  ;;  %2359 = vrot.lane.b32.xlu1 %v2838_v40, %s3083_s20 }
 0x50f   :  { %v2288_v37 = vpop.f32.mrf.mxu0 }
 0x510   :  { %2311 = vst.msk [vmem:[%s4316_s10 + $0x70] sm:$0xff] %vm260_vm2, %v2288_v37  ;;  %2357 = vrot.lane.b32.xlu0 %v2288_v37, %s3083_s20 }
 0x529   :  { %v2332_v24 = vpop.permute.xlu1 %2331 }
 0x52a   :  { %2379 = vst.msk [vmem:[%s4317_s11 + $0x8] sm:$0xff] %vm2377_vm1, %v2332_v24 }
 0x52b   :  { %v2330_v19 = vpop.permute.xlu0 %2329 }
 0x52c   :  { %2378 = vst.msk [vmem:[%s4317_s11] sm:$0xff] %vm2377_vm1, %v2330_v19 }
 0x538   :  { %v2336_v31 = vpop.permute.xlu1 %2335 }
 0x539   :  { %2381 = vst.msk [vmem:[%s4317_s11 + $0x18] sm:$0xff] %vm2377_vm1, %v2336_v31 }
 0x53a   :  { %v2334_v44 = vpop.permute.xlu0 %2333 }
 0x53b   :  { %2380 = vst.msk [vmem:[%s4317_s11 + $0x10] sm:$0xff] %vm2377_vm1, %v2334_v44 }
 0x53f   :  { %v2340_v11 = vpop.permute.xlu1 %2339 }
 0x540   :  { %2383 = vst.msk [vmem:[%s4317_s11 + $0x28] sm:$0xff] %vm2377_vm1, %v2340_v11 }
 0x541   :  { %v2338_v7 = vpop.permute.xlu0 %2337 }
 0x542   :  { %2382 = vst.msk [vmem:[%s4317_s11 + $0x20] sm:$0xff] %vm2377_vm1, %v2338_v7 }
 0x550   :  { %v2344_v29 = vpop.permute.xlu1 %2343 }
 0x551   :  { %2385 = vst.msk [vmem:[%s4317_s11 + $0x38] sm:$0xff] %vm2377_vm1, %v2344_v29 }
 0x552   :  { %v2342_v54 = vpop.permute.xlu0 %2341 }
 0x553   :  { %2384 = vst.msk [vmem:[%s4317_s11 + $0x30] sm:$0xff] %vm2377_vm1, %v2342_v54 }
 0x557   :  { %v2348_v12 = vpop.permute.xlu1 %2347 }
 0x558   :  { %2387 = vst.msk [vmem:[%s4317_s11 + $0x48] sm:$0xff] %vm2377_vm1, %v2348_v12 }
 0x559   :  { %v2346_v0 = vpop.permute.xlu0 %2345 }
 0x55a   :  { %2386 = vst.msk [vmem:[%s4317_s11 + $0x40] sm:$0xff] %vm2377_vm1, %v2346_v0 }
 0x568   :  { %v2352_v30 = vpop.permute.xlu1 %2351 }
 0x569   :  { %2389 = vst.msk [vmem:[%s4317_s11 + $0x58] sm:$0xff] %vm2377_vm1, %v2352_v30 }
 0x56a   :  { %v2350_v47 = vpop.permute.xlu0 %2349 }
 0x56b   :  { %2388 = vst.msk [vmem:[%s4317_s11 + $0x50] sm:$0xff] %vm2377_vm1, %v2350_v47 }
 0x56f   :  { %v2356_v60 = vpop.permute.xlu1 %2355 }
 0x570   :  { %2391 = vst.msk [vmem:[%s4317_s11 + $0x68] sm:$0xff] %vm2377_vm1, %v2356_v60 }
 0x571   :  { %v2354_v23 = vpop.permute.xlu0 %2353 }
 0x572   :  { %2390 = vst.msk [vmem:[%s4317_s11 + $0x60] sm:$0xff] %vm2377_vm1, %v2354_v23 }
 0x580   :  { %v2360_v49 = vpop.permute.xlu1 %2359 }
 0x581   :  { %2393 = vst.msk [vmem:[%s4317_s11 + $0x78] sm:$0xff] %vm2377_vm1, %v2360_v49 }
 0x582   :  { %v2358_v61 = vpop.permute.xlu0 %2357 }
 0x583   :  { %2392 = vst.msk [vmem:[%s4317_s11 + $0x70] sm:$0xff] %vm2377_vm1, %v2358_v61 }

</bundles_post_ra>
